<compile_context>
chip_gen: v7x
topology: tpu7x:2x2x1
jax: 0.10.0
libtpu: 0.0.40
codegen_flags: <defaults>
</compile_context>

<pallas_src>
import math

import jax
import jax.numpy as jnp
from jax.experimental import pallas as pl
from jax.experimental.pallas import tpu as pltpu

# ----------------------------- model config ---------------------------------
EMBED_DIM = 32
NUM_HEADS = 4
NUM_BLOCKS = 2
NUM_CLASSES = 2          # unused by forward (class head is Linear(D, 1), as in PyTorch)
VOCAB_SIZE = 100
VOCAB_PAD = 128          # vocab axis padded to one lane tile
FFN_DIM = 32
SEQ_LEN = 8
BATCH = 2
LN_EPS = 1e-5            # nn.LayerNorm default


# ----------------------------- fused Pallas kernel ---------------------------
def _layer_norm(val, gamma, beta):
    # variance as mean(x*x) - mean(x)^2: the two lane reductions are independent
    mu = jnp.mean(val, axis=-1, keepdims=True)
    ms = jnp.mean(val * val, axis=-1, keepdims=True)
    var = ms - mu * mu
    return (val - mu) * jax.lax.rsqrt(var + LN_EPS) * gamma + beta


def fused_classifier_kernel(ids_ref, emb_ref, wblk_ref, vecs_ref,
                            pemask_ref, head_ref, o_ref):
    B, S, D, H, F = BATCH, SEQ_LEN, EMBED_DIM, NUM_HEADS, FFN_DIM
    BS = B * S
    dh = D // H

    # ---- embedding lookup via one-hot matmul (fused gather, MXU-friendly) ----
    # TODO(synk): out-of-range token ids produce a zero row instead of a gather error.
    ids = ids_ref[...]                                               # (BS, 1) int32
    vocab_iota = jax.lax.broadcasted_iota(jnp.int32, (BS, VOCAB_PAD), 1)
    onehot = (vocab_iota == ids).astype(jnp.float32)                 # (BS, 128)
    tok = jnp.dot(onehot, emb_ref[...],
                  preferred_element_type=jnp.float32)                # (BS, D), sqrt(D) pre-scaled

    pemask = pemask_ref[...]                                         # (BS, D + BS)
    pe = pemask[:, :D]                                               # (BS, D) pre-tiled PE
    mask = pemask[:, D:D + BS]                                       # (BS, BS) 0 / -1e9 block-diag

    x = tok + pe

    inv_sqrt_dh = jnp.float32(1.0 / math.sqrt(dh))

    # ---- transformer encoder blocks (static unroll, weights stacked per block) ----
    for blk in range(NUM_BLOCKS):
        w = wblk_ref[blk]                                            # (D, 6D): [Wq|Wk|Wv|Wo|W1|W2]
        vec = vecs_ref[blk]                                          # (3, 128)
        b_qkv = vec[0:1, :3 * D]                                     # (1, 3D)
        bo = vec[0:1, 3 * D:4 * D]                                   # (1, D)
        b1 = vec[1:2, 0:F]
        b2 = vec[1:2, F:F + D]
        g1 = vec[1:2, F + D:F + 2 * D]
        beta1 = vec[1:2, F + 2 * D:F + 3 * D]
        g2 = vec[2:3, 0:D]
        beta2 = vec[2:3, D:2 * D]

        wo = w[:, 3 * D:4 * D]                                       # (D, D)
        w1 = w[:, 4 * D:4 * D + F]                                   # (D, F)
        w2 = w[:, 4 * D + F:4 * D + 2 * F]                           # (F, D)

        # fused Q/K/V projection + one fused (1,3D) bias add
        qkv = jnp.dot(x, w[:, :3 * D],
                      preferred_element_type=jnp.float32) + b_qkv    # (BS, 3D)

        # multi-head attention with flat 2-D matmuls and a static batch mask
        head_outs = []
        for h in range(H):
            qh = qkv[:, h * dh:(h + 1) * dh]                         # (BS, dh)
            kh = qkv[:, D + h * dh:D + (h + 1) * dh]                 # (BS, dh)
            vh = qkv[:, 2 * D + h * dh:2 * D + (h + 1) * dh]         # (BS, dh)
            s = jax.lax.dot_general(qh, kh, (((1,), (1,)), ((), ())),
                                    preferred_element_type=jnp.float32)  # (BS, BS)
            s = s * inv_sqrt_dh + mask
            s = s - jnp.max(s, axis=-1, keepdims=True)
            e = jnp.exp(s)
            p = e * pl.reciprocal(jnp.sum(e, axis=-1, keepdims=True), approx=True)
            head_outs.append(jnp.dot(p, vh, preferred_element_type=jnp.float32))  # (BS, dh)

        # single (BS,D)x(D,D) output projection instead of H small dots + adds
        attn = jnp.dot(jnp.concatenate(head_outs, axis=1), wo,
                       preferred_element_type=jnp.float32) + bo      # (BS, D)

        # residual + LN, FFN, residual + LN (dropout = identity in eval mode)
        x1 = _layer_norm(x + attn, g1, beta1)
        hid = jnp.maximum(
            jnp.dot(x1, w1, preferred_element_type=jnp.float32) + b1, 0.0)
        ffn = jnp.dot(hid, w2, preferred_element_type=jnp.float32) + b2
        x = _layer_norm(x1 + ffn, g2, beta2)

    # ---- mean pool (precomputed matrix) + classification head (two tiny MXU dots) ----
    # TODO(synk): nn.Dropout is stochastic in train mode; implemented as eval-mode identity.
    hw = head_ref[...]                                               # (D, BS+2)
    pool = hw[0:B, 0:BS]                                             # (B, BS), rows sum to 1/S pattern
    w_cls_t = hw[:, BS:BS + 1]                                       # (D, 1)
    b_cls = hw[0:1, BS + 1:BS + 2]                                   # (1, 1)

    pooled = jnp.dot(pool, x, preferred_element_type=jnp.float32)    # (B, D)
    logits = jnp.dot(pooled, w_cls_t,
                     preferred_element_type=jnp.float32) + b_cls     # (B, 1)
    o_ref[...] = logits


# ----------------------------- wrapper ----------------------------------------
@jax.jit
def text_classifier_forward(packed, token_ids):
    B, S = token_ids.shape
    ids = token_ids.reshape(B * S, 1).astype(jnp.int32)
    vmem = pltpu.MemorySpace.VMEM
    # TODO(synk): for large real batches, add a grid over batch with
    # dimension_semantics=("parallel",) to shard across v7x's two TensorCores.
    return pl.pallas_call(
        fused_classifier_kernel,
        out_shape=jax.ShapeDtypeStruct((B, 1), jnp.float32),
        in_specs=[pl.BlockSpec(memory_space=vmem)] * 6,
        out_specs=pl.BlockSpec(memory_space=vmem),
    )(ids, packed["emb"], packed["w_blocks"], packed["vecs"],
      packed["pe_mask"], packed["head"])


# ----------------------------- parameter init / packing ------------------------
def sinusoidal_pe(seq_len, d):
    pos = jnp.arange(seq_len, dtype=jnp.float32)[:, None]
    i = jnp.arange(0, d, 2, dtype=jnp.float32)
    denom = jnp.power(10000.0, i / d)
    pe = jnp.zeros((seq_len, d), jnp.float32)
    pe = pe.at[:, 0::2].set(jnp.sin(pos / denom))
    pe = pe.at[:, 1::2].set(jnp.cos(pos / denom))
    return pe


def init_params(key):
    D, F = EMBED_DIM, FFN_DIM
    n_keys = 2 + NUM_BLOCKS * 6
    keys = iter(jax.random.split(key, n_keys))

    def dense(k, shape, fan_in):
        bound = 1.0 / math.sqrt(fan_in)
        return jax.random.uniform(k, shape, jnp.float32, -bound, bound)

    params = {
        "embedding": jax.random.normal(next(keys), (VOCAB_SIZE, D), jnp.float32),
        "pe": sinusoidal_pe(SEQ_LEN, D),
        "blocks": [],
    }
    for _ in range(NUM_BLOCKS):
        blk = {
            "wq": dense(next(keys), (D, D), D), "bq": jnp.zeros((1, D), jnp.float32),
            "wk": dense(next(keys), (D, D), D), "bk": jnp.zeros((1, D), jnp.float32),
            "wv": dense(next(keys), (D, D), D), "bv": jnp.zeros((1, D), jnp.float32),
            "wo": dense(next(keys), (D, D), D), "bo": jnp.zeros((1, D), jnp.float32),
            "w1": dense(next(keys), (D, F), D), "b1": jnp.zeros((1, F), jnp.float32),
            "w2": dense(next(keys), (F, D), F), "b2": jnp.zeros((1, D), jnp.float32),
            "g1": jnp.ones((1, D), jnp.float32), "beta1": jnp.zeros((1, D), jnp.float32),
            "g2": jnp.ones((1, D), jnp.float32), "beta2": jnp.zeros((1, D), jnp.float32),
        }
        params["blocks"].append(blk)
    params["w_cls"] = dense(next(keys), (1, D), D)      # Linear(embed_dim, 1) weight
    params["b_cls"] = jnp.zeros((1, 1), jnp.float32)
    return params


def pack_params(params):
    """One-time packing of weights/constants into consolidated VMEM-friendly slabs."""
    D, F, B, S = EMBED_DIM, FFN_DIM, BATCH, SEQ_LEN
    BS = B * S
    assert FFN_DIM == EMBED_DIM, "packed slabs assume FFN_DIM == EMBED_DIM"
    assert VOCAB_SIZE <= VOCAB_PAD and D % NUM_HEADS == 0

    # embedding: pre-scale by sqrt(D) (PositionalEncoder scale), pad vocab to 128
    emb = params["embedding"] * jnp.float32(math.sqrt(D))
    emb = jnp.concatenate(
        [emb, jnp.zeros((VOCAB_PAD - VOCAB_SIZE, D), jnp.float32)], axis=0)   # (128, D)

    blocks = params["blocks"]
    w_blocks = jnp.stack([
        jnp.concatenate([b["wq"], b["wk"], b["wv"], b["wo"], b["w1"], b["w2"]], axis=1)
        for b in blocks])                                                      # (NB, D, 6D)

    def vec_rows(b):
        row0 = jnp.concatenate([b["bq"], b["bk"], b["bv"], b["bo"]], axis=1)       # (1,128)
        row1 = jnp.concatenate([b["b1"], b["b2"], b["g1"], b["beta1"]], axis=1)    # (1,128)
        row2 = jnp.concatenate([b["g2"], b["beta2"],
                                jnp.zeros((1, 128 - 2 * D), jnp.float32)], axis=1)  # (1,128)
        return jnp.concatenate([row0, row1, row2], axis=0)                          # (3,128)

    vecs = jnp.stack([vec_rows(b) for b in blocks])                            # (NB, 3, 128)

    # positional encoding pre-tiled to (B*S, D) + block-diagonal additive batch mask
    pe_tiled = jnp.tile(params["pe"], (B, 1))                                  # (BS, D)
    seq_of = jnp.arange(BS, dtype=jnp.int32) // S
    mask = jnp.where(seq_of[:, None] == seq_of[None, :],
                     jnp.float32(0.0), jnp.float32(-1e9))                      # (BS, BS)
    pe_mask = jnp.concatenate([pe_tiled, mask], axis=1)                        # (BS, D+BS)

    # mean-pool matrix (B, BS) + classification head packed as one slab (D, BS+2)
    pool = jnp.where(seq_of[None, :] == jnp.arange(B, dtype=jnp.int32)[:, None],
                     jnp.float32(1.0 / S), jnp.float32(0.0))                   # (B, BS)
    head = jnp.zeros((D, BS + 2), jnp.float32)
    head = head.at[0:B, 0:BS].set(pool)
    head = head.at[:, BS].set(params["w_cls"][0, :])                           # w_cls as (D,1) column
    head = head.at[0, BS + 1].set(params["b_cls"][0, 0])

    return {
        "emb": emb,
        "w_blocks": w_blocks,
        "vecs": vecs,
        "pe_mask": pe_mask,
        "head": head,
    }


# ----------------------------- main -------------------------------------------
if __name__ == "__main__":
    key = jax.random.PRNGKey(0)
    pkey, dkey = jax.random.split(key)
    params = init_params(pkey)
    packed = pack_params(params)
    token_ids = jax.random.randint(dkey, (BATCH, SEQ_LEN), 0, VOCAB_SIZE, dtype=jnp.int32)

    logits = text_classifier_forward(packed, token_ids)
    logits = jax.block_until_ready(logits)
    assert logits.shape == (BATCH, 1) and logits.dtype == jnp.float32
    print("KERNEL_OK")
</pallas_src>

<mosaic_0001>
module attributes {stable_mosaic.version = 11 : i64} {
  func.func @fused_classifier_kernel(%arg0: memref<16x1xi32, #tpu.memory_space<vmem>>, %arg1: memref<128x32xf32, #tpu.memory_space<vmem>>, %arg2: memref<2x32x192xf32, #tpu.memory_space<vmem>>, %arg3: memref<2x3x128xf32, #tpu.memory_space<vmem>>, %arg4: memref<16x48xf32, #tpu.memory_space<vmem>>, %arg5: memref<32x18xf32, #tpu.memory_space<vmem>>, %arg6: memref<2x1xf32, #tpu.memory_space<vmem>>) attributes {dimension_semantics = [], scalar_prefetch = 0 : i64, scratch_operands = 0 : i64, tpu.core_type = #tpu.core_type<tc>} {
    %c0 = arith.constant 0 : index
    %c0_0 = arith.constant 0 : index
    %0 = vector.load %arg0[%c0, %c0_0] : memref<16x1xi32, #tpu.memory_space<vmem>>, vector<16x1xi32>
    %1 = tpu.iota {dimensions = array<i32: 1>} : vector<16x128xi32>
    %2 = vector.broadcast %0 : vector<16x1xi32> to vector<16x128xi32>
    %3 = arith.cmpi eq, %1, %2 : vector<16x128xi32>
    %4 = arith.extui %3 : vector<16x128xi1> to vector<16x128xi32>
    %5 = arith.sitofp %4 : vector<16x128xi32> to vector<16x128xf32>
    %c0_1 = arith.constant 0 : index
    %c0_2 = arith.constant 0 : index
    %6 = vector.load %arg1[%c0_1, %c0_2] : memref<128x32xf32, #tpu.memory_space<vmem>>, vector<128x32xf32>
    %cst = arith.constant dense<0.000000e+00> : vector<16x32xf32>
    %7 = tpu.matmul %5, %6, %cst {dimension_numbers = #tpu.dot_dimension_numbers<[1], [0], [0], [1], [0, 0, 1, 1], [], []>} : vector<16x128xf32>, vector<128x32xf32>, vector<16x32xf32> -> vector<16x32xf32>
    %c0_3 = arith.constant 0 : index
    %c0_4 = arith.constant 0 : index
    %8 = vector.load %arg4[%c0_3, %c0_4] : memref<16x48xf32, #tpu.memory_space<vmem>>, vector<16x48xf32>
    %9 = vector.extract_strided_slice %8 {offsets = [0, 0], sizes = [16, 32], strides = [1, 1]} : vector<16x48xf32> to vector<16x32xf32>
    %10 = vector.extract_strided_slice %8 {offsets = [0, 32], sizes = [16, 16], strides = [1, 1]} : vector<16x48xf32> to vector<16x16xf32>
    %11 = arith.addf %7, %9 : vector<16x32xf32>
    %c0_5 = arith.constant 0 : index
    %c0_6 = arith.constant 0 : index
    %c0_7 = arith.constant 0 : index
    %12 = vector.load %arg2[%c0_5, %c0_6, %c0_7] : memref<2x32x192xf32, #tpu.memory_space<vmem>>, vector<1x32x192xf32>
    %13 = vector.shape_cast %12 : vector<1x32x192xf32> to vector<32x192xf32>
    %c0_8 = arith.constant 0 : index
    %c0_9 = arith.constant 0 : index
    %c0_10 = arith.constant 0 : index
    %14 = vector.load %arg3[%c0_8, %c0_9, %c0_10] : memref<2x3x128xf32, #tpu.memory_space<vmem>>, vector<1x3x128xf32>
    %15 = vector.shape_cast %14 : vector<1x3x128xf32> to vector<3x128xf32>
    %16 = vector.extract_strided_slice %15 {offsets = [0, 0], sizes = [1, 96], strides = [1, 1]} : vector<3x128xf32> to vector<1x96xf32>
    %17 = vector.extract_strided_slice %15 {offsets = [0, 96], sizes = [1, 32], strides = [1, 1]} : vector<3x128xf32> to vector<1x32xf32>
    %18 = vector.extract_strided_slice %15 {offsets = [1, 0], sizes = [1, 32], strides = [1, 1]} : vector<3x128xf32> to vector<1x32xf32>
    %19 = vector.extract_strided_slice %15 {offsets = [1, 32], sizes = [1, 32], strides = [1, 1]} : vector<3x128xf32> to vector<1x32xf32>
    %20 = vector.extract_strided_slice %15 {offsets = [1, 64], sizes = [1, 32], strides = [1, 1]} : vector<3x128xf32> to vector<1x32xf32>
    %21 = vector.extract_strided_slice %15 {offsets = [1, 96], sizes = [1, 32], strides = [1, 1]} : vector<3x128xf32> to vector<1x32xf32>
    %22 = vector.extract_strided_slice %15 {offsets = [2, 0], sizes = [1, 32], strides = [1, 1]} : vector<3x128xf32> to vector<1x32xf32>
    %23 = vector.extract_strided_slice %15 {offsets = [2, 32], sizes = [1, 32], strides = [1, 1]} : vector<3x128xf32> to vector<1x32xf32>
    %24 = vector.extract_strided_slice %13 {offsets = [0, 96], sizes = [32, 32], strides = [1, 1]} : vector<32x192xf32> to vector<32x32xf32>
    %25 = vector.extract_strided_slice %13 {offsets = [0, 128], sizes = [32, 32], strides = [1, 1]} : vector<32x192xf32> to vector<32x32xf32>
    %26 = vector.extract_strided_slice %13 {offsets = [0, 160], sizes = [32, 32], strides = [1, 1]} : vector<32x192xf32> to vector<32x32xf32>
    %27 = vector.extract_strided_slice %13 {offsets = [0, 0], sizes = [32, 96], strides = [1, 1]} : vector<32x192xf32> to vector<32x96xf32>
    %cst_11 = arith.constant dense<0.000000e+00> : vector<16x96xf32>
    %28 = tpu.matmul %11, %27, %cst_11 {dimension_numbers = #tpu.dot_dimension_numbers<[1], [0], [0], [1], [0, 0, 1, 1], [], []>} : vector<16x32xf32>, vector<32x96xf32>, vector<16x96xf32> -> vector<16x96xf32>
    %29 = vector.broadcast %16 : vector<1x96xf32> to vector<16x96xf32>
    %30 = arith.addf %28, %29 : vector<16x96xf32>
    %31 = vector.extract_strided_slice %30 {offsets = [0, 0], sizes = [16, 8], strides = [1, 1]} : vector<16x96xf32> to vector<16x8xf32>
    %32 = vector.extract_strided_slice %30 {offsets = [0, 32], sizes = [16, 8], strides = [1, 1]} : vector<16x96xf32> to vector<16x8xf32>
    %33 = vector.extract_strided_slice %30 {offsets = [0, 64], sizes = [16, 8], strides = [1, 1]} : vector<16x96xf32> to vector<16x8xf32>
    %cst_12 = arith.constant dense<0.000000e+00> : vector<16x16xf32>
    %34 = tpu.matmul %31, %32, %cst_12 {dimension_numbers = #tpu.dot_dimension_numbers<[1], [1], [0], [0], [0, 0, 1, 0], [], []>} : vector<16x8xf32>, vector<16x8xf32>, vector<16x16xf32> -> vector<16x16xf32>
    %cst_13 = arith.constant 0.353553385 : f32
    %35 = vector.broadcast %cst_13 : f32 to vector<16x16xf32>
    %36 = arith.mulf %34, %35 : vector<16x16xf32>
    %37 = arith.addf %36, %10 : vector<16x16xf32>
    %cst_14 = arith.constant dense<0xFF800000> : vector<16xf32>
    %38 = vector.multi_reduction <maximumf>, %37, %cst_14 [1] : vector<16x16xf32> to vector<16xf32>
    %39 = vector.shape_cast %38 : vector<16xf32> to vector<16x1xf32>
    %40 = vector.broadcast %39 : vector<16x1xf32> to vector<16x16xf32>
    %41 = arith.subf %37, %40 : vector<16x16xf32>
    %42 = math.exp %41 : vector<16x16xf32>
    %cst_15 = arith.constant dense<0.000000e+00> : vector<16xf32>
    %43 = vector.multi_reduction <add>, %42, %cst_15 [1] : vector<16x16xf32> to vector<16xf32>
    %44 = vector.shape_cast %43 : vector<16xf32> to vector<16x1xf32>
    %45 = tpu.reciprocal %44 {approx = true} : vector<16x1xf32> -> vector<16x1xf32>
    %46 = vector.broadcast %45 : vector<16x1xf32> to vector<16x16xf32>
    %47 = arith.mulf %42, %46 : vector<16x16xf32>
    %cst_16 = arith.constant dense<0.000000e+00> : vector<16x8xf32>
    %48 = tpu.matmul %47, %33, %cst_16 {dimension_numbers = #tpu.dot_dimension_numbers<[1], [0], [0], [1], [0, 0, 1, 1], [], []>} : vector<16x16xf32>, vector<16x8xf32>, vector<16x8xf32> -> vector<16x8xf32>
    %49 = vector.extract_strided_slice %30 {offsets = [0, 8], sizes = [16, 8], strides = [1, 1]} : vector<16x96xf32> to vector<16x8xf32>
    %50 = vector.extract_strided_slice %30 {offsets = [0, 40], sizes = [16, 8], strides = [1, 1]} : vector<16x96xf32> to vector<16x8xf32>
    %51 = vector.extract_strided_slice %30 {offsets = [0, 72], sizes = [16, 8], strides = [1, 1]} : vector<16x96xf32> to vector<16x8xf32>
    %cst_17 = arith.constant dense<0.000000e+00> : vector<16x16xf32>
    %52 = tpu.matmul %49, %50, %cst_17 {dimension_numbers = #tpu.dot_dimension_numbers<[1], [1], [0], [0], [0, 0, 1, 0], [], []>} : vector<16x8xf32>, vector<16x8xf32>, vector<16x16xf32> -> vector<16x16xf32>
    %cst_18 = arith.constant 0.353553385 : f32
    %53 = vector.broadcast %cst_18 : f32 to vector<16x16xf32>
    %54 = arith.mulf %52, %53 : vector<16x16xf32>
    %55 = arith.addf %54, %10 : vector<16x16xf32>
    %cst_19 = arith.constant dense<0xFF800000> : vector<16xf32>
    %56 = vector.multi_reduction <maximumf>, %55, %cst_19 [1] : vector<16x16xf32> to vector<16xf32>
    %57 = vector.shape_cast %56 : vector<16xf32> to vector<16x1xf32>
    %58 = vector.broadcast %57 : vector<16x1xf32> to vector<16x16xf32>
    %59 = arith.subf %55, %58 : vector<16x16xf32>
    %60 = math.exp %59 : vector<16x16xf32>
    %cst_20 = arith.constant dense<0.000000e+00> : vector<16xf32>
    %61 = vector.multi_reduction <add>, %60, %cst_20 [1] : vector<16x16xf32> to vector<16xf32>
    %62 = vector.shape_cast %61 : vector<16xf32> to vector<16x1xf32>
    %63 = tpu.reciprocal %62 {approx = true} : vector<16x1xf32> -> vector<16x1xf32>
    %64 = vector.broadcast %63 : vector<16x1xf32> to vector<16x16xf32>
    %65 = arith.mulf %60, %64 : vector<16x16xf32>
    %cst_21 = arith.constant dense<0.000000e+00> : vector<16x8xf32>
    %66 = tpu.matmul %65, %51, %cst_21 {dimension_numbers = #tpu.dot_dimension_numbers<[1], [0], [0], [1], [0, 0, 1, 1], [], []>} : vector<16x16xf32>, vector<16x8xf32>, vector<16x8xf32> -> vector<16x8xf32>
    %67 = vector.extract_strided_slice %30 {offsets = [0, 16], sizes = [16, 8], strides = [1, 1]} : vector<16x96xf32> to vector<16x8xf32>
    %68 = vector.extract_strided_slice %30 {offsets = [0, 48], sizes = [16, 8], strides = [1, 1]} : vector<16x96xf32> to vector<16x8xf32>
    %69 = vector.extract_strided_slice %30 {offsets = [0, 80], sizes = [16, 8], strides = [1, 1]} : vector<16x96xf32> to vector<16x8xf32>
    %cst_22 = arith.constant dense<0.000000e+00> : vector<16x16xf32>
    %70 = tpu.matmul %67, %68, %cst_22 {dimension_numbers = #tpu.dot_dimension_numbers<[1], [1], [0], [0], [0, 0, 1, 0], [], []>} : vector<16x8xf32>, vector<16x8xf32>, vector<16x16xf32> -> vector<16x16xf32>
    %cst_23 = arith.constant 0.353553385 : f32
    %71 = vector.broadcast %cst_23 : f32 to vector<16x16xf32>
    %72 = arith.mulf %70, %71 : vector<16x16xf32>
    %73 = arith.addf %72, %10 : vector<16x16xf32>
    %cst_24 = arith.constant dense<0xFF800000> : vector<16xf32>
    %74 = vector.multi_reduction <maximumf>, %73, %cst_24 [1] : vector<16x16xf32> to vector<16xf32>
    %75 = vector.shape_cast %74 : vector<16xf32> to vector<16x1xf32>
    %76 = vector.broadcast %75 : vector<16x1xf32> to vector<16x16xf32>
    %77 = arith.subf %73, %76 : vector<16x16xf32>
    %78 = math.exp %77 : vector<16x16xf32>
    %cst_25 = arith.constant dense<0.000000e+00> : vector<16xf32>
    %79 = vector.multi_reduction <add>, %78, %cst_25 [1] : vector<16x16xf32> to vector<16xf32>
    %80 = vector.shape_cast %79 : vector<16xf32> to vector<16x1xf32>
    %81 = tpu.reciprocal %80 {approx = true} : vector<16x1xf32> -> vector<16x1xf32>
    %82 = vector.broadcast %81 : vector<16x1xf32> to vector<16x16xf32>
    %83 = arith.mulf %78, %82 : vector<16x16xf32>
    %cst_26 = arith.constant dense<0.000000e+00> : vector<16x8xf32>
    %84 = tpu.matmul %83, %69, %cst_26 {dimension_numbers = #tpu.dot_dimension_numbers<[1], [0], [0], [1], [0, 0, 1, 1], [], []>} : vector<16x16xf32>, vector<16x8xf32>, vector<16x8xf32> -> vector<16x8xf32>
    %85 = vector.extract_strided_slice %30 {offsets = [0, 24], sizes = [16, 8], strides = [1, 1]} : vector<16x96xf32> to vector<16x8xf32>
    %86 = vector.extract_strided_slice %30 {offsets = [0, 56], sizes = [16, 8], strides = [1, 1]} : vector<16x96xf32> to vector<16x8xf32>
    %87 = vector.extract_strided_slice %30 {offsets = [0, 88], sizes = [16, 8], strides = [1, 1]} : vector<16x96xf32> to vector<16x8xf32>
    %cst_27 = arith.constant dense<0.000000e+00> : vector<16x16xf32>
    %88 = tpu.matmul %85, %86, %cst_27 {dimension_numbers = #tpu.dot_dimension_numbers<[1], [1], [0], [0], [0, 0, 1, 0], [], []>} : vector<16x8xf32>, vector<16x8xf32>, vector<16x16xf32> -> vector<16x16xf32>
    %cst_28 = arith.constant 0.353553385 : f32
    %89 = vector.broadcast %cst_28 : f32 to vector<16x16xf32>
    %90 = arith.mulf %88, %89 : vector<16x16xf32>
    %91 = arith.addf %90, %10 : vector<16x16xf32>
    %cst_29 = arith.constant dense<0xFF800000> : vector<16xf32>
    %92 = vector.multi_reduction <maximumf>, %91, %cst_29 [1] : vector<16x16xf32> to vector<16xf32>
    %93 = vector.shape_cast %92 : vector<16xf32> to vector<16x1xf32>
    %94 = vector.broadcast %93 : vector<16x1xf32> to vector<16x16xf32>
    %95 = arith.subf %91, %94 : vector<16x16xf32>
    %96 = math.exp %95 : vector<16x16xf32>
    %cst_30 = arith.constant dense<0.000000e+00> : vector<16xf32>
    %97 = vector.multi_reduction <add>, %96, %cst_30 [1] : vector<16x16xf32> to vector<16xf32>
    %98 = vector.shape_cast %97 : vector<16xf32> to vector<16x1xf32>
    %99 = tpu.reciprocal %98 {approx = true} : vector<16x1xf32> -> vector<16x1xf32>
    %100 = vector.broadcast %99 : vector<16x1xf32> to vector<16x16xf32>
    %101 = arith.mulf %96, %100 : vector<16x16xf32>
    %cst_31 = arith.constant dense<0.000000e+00> : vector<16x8xf32>
    %102 = tpu.matmul %101, %87, %cst_31 {dimension_numbers = #tpu.dot_dimension_numbers<[1], [0], [0], [1], [0, 0, 1, 1], [], []>} : vector<16x16xf32>, vector<16x8xf32>, vector<16x8xf32> -> vector<16x8xf32>
    %103 = tpu.concatenate %48, %66, %84, %102 in 1 : vector<16x8xf32>, vector<16x8xf32>, vector<16x8xf32>, vector<16x8xf32> -> vector<16x32xf32>
    %cst_32 = arith.constant dense<0.000000e+00> : vector<16x32xf32>
    %104 = tpu.matmul %103, %24, %cst_32 {dimension_numbers = #tpu.dot_dimension_numbers<[1], [0], [0], [1], [0, 0, 1, 1], [], []>} : vector<16x32xf32>, vector<32x32xf32>, vector<16x32xf32> -> vector<16x32xf32>
    %105 = vector.broadcast %17 : vector<1x32xf32> to vector<16x32xf32>
    %106 = arith.addf %104, %105 : vector<16x32xf32>
    %107 = arith.addf %11, %106 : vector<16x32xf32>
    %cst_33 = arith.constant dense<0.000000e+00> : vector<16xf32>
    %108 = vector.multi_reduction <add>, %107, %cst_33 [1] : vector<16x32xf32> to vector<16xf32>
    %109 = vector.shape_cast %108 : vector<16xf32> to vector<16x1xf32>
    %cst_34 = arith.constant 3.200000e+01 : f32
    %110 = vector.broadcast %cst_34 : f32 to vector<16x1xf32>
    %111 = arith.divf %109, %110 : vector<16x1xf32>
    %112 = arith.mulf %107, %107 : vector<16x32xf32>
    %cst_35 = arith.constant dense<0.000000e+00> : vector<16xf32>
    %113 = vector.multi_reduction <add>, %112, %cst_35 [1] : vector<16x32xf32> to vector<16xf32>
    %114 = vector.shape_cast %113 : vector<16xf32> to vector<16x1xf32>
    %cst_36 = arith.constant 3.200000e+01 : f32
    %115 = vector.broadcast %cst_36 : f32 to vector<16x1xf32>
    %116 = arith.divf %114, %115 : vector<16x1xf32>
    %117 = arith.mulf %111, %111 : vector<16x1xf32>
    %118 = arith.subf %116, %117 : vector<16x1xf32>
    %119 = vector.broadcast %111 : vector<16x1xf32> to vector<16x32xf32>
    %120 = arith.subf %107, %119 : vector<16x32xf32>
    %cst_37 = arith.constant 9.99999974E-6 : f32
    %121 = vector.broadcast %cst_37 : f32 to vector<16x1xf32>
    %122 = arith.addf %118, %121 : vector<16x1xf32>
    %123 = math.rsqrt %122 : vector<16x1xf32>
    %124 = vector.broadcast %123 : vector<16x1xf32> to vector<16x32xf32>
    %125 = arith.mulf %120, %124 : vector<16x32xf32>
    %126 = vector.broadcast %20 : vector<1x32xf32> to vector<16x32xf32>
    %127 = arith.mulf %125, %126 : vector<16x32xf32>
    %128 = vector.broadcast %21 : vector<1x32xf32> to vector<16x32xf32>
    %129 = arith.addf %127, %128 : vector<16x32xf32>
    %cst_38 = arith.constant dense<0.000000e+00> : vector<16x32xf32>
    %130 = tpu.matmul %129, %25, %cst_38 {dimension_numbers = #tpu.dot_dimension_numbers<[1], [0], [0], [1], [0, 0, 1, 1], [], []>} : vector<16x32xf32>, vector<32x32xf32>, vector<16x32xf32> -> vector<16x32xf32>
    %131 = vector.broadcast %18 : vector<1x32xf32> to vector<16x32xf32>
    %132 = arith.addf %130, %131 : vector<16x32xf32>
    %cst_39 = arith.constant 0.000000e+00 : f32
    %133 = vector.broadcast %cst_39 : f32 to vector<16x32xf32>
    %134 = arith.maximumf %132, %133 : vector<16x32xf32>
    %cst_40 = arith.constant dense<0.000000e+00> : vector<16x32xf32>
    %135 = tpu.matmul %134, %26, %cst_40 {dimension_numbers = #tpu.dot_dimension_numbers<[1], [0], [0], [1], [0, 0, 1, 1], [], []>} : vector<16x32xf32>, vector<32x32xf32>, vector<16x32xf32> -> vector<16x32xf32>
    %136 = vector.broadcast %19 : vector<1x32xf32> to vector<16x32xf32>
    %137 = arith.addf %135, %136 : vector<16x32xf32>
    %138 = arith.addf %129, %137 : vector<16x32xf32>
    %cst_41 = arith.constant dense<0.000000e+00> : vector<16xf32>
    %139 = vector.multi_reduction <add>, %138, %cst_41 [1] : vector<16x32xf32> to vector<16xf32>
    %140 = vector.shape_cast %139 : vector<16xf32> to vector<16x1xf32>
    %cst_42 = arith.constant 3.200000e+01 : f32
    %141 = vector.broadcast %cst_42 : f32 to vector<16x1xf32>
    %142 = arith.divf %140, %141 : vector<16x1xf32>
    %143 = arith.mulf %138, %138 : vector<16x32xf32>
    %cst_43 = arith.constant dense<0.000000e+00> : vector<16xf32>
    %144 = vector.multi_reduction <add>, %143, %cst_43 [1] : vector<16x32xf32> to vector<16xf32>
    %145 = vector.shape_cast %144 : vector<16xf32> to vector<16x1xf32>
    %cst_44 = arith.constant 3.200000e+01 : f32
    %146 = vector.broadcast %cst_44 : f32 to vector<16x1xf32>
    %147 = arith.divf %145, %146 : vector<16x1xf32>
    %148 = arith.mulf %142, %142 : vector<16x1xf32>
    %149 = arith.subf %147, %148 : vector<16x1xf32>
    %150 = vector.broadcast %142 : vector<16x1xf32> to vector<16x32xf32>
    %151 = arith.subf %138, %150 : vector<16x32xf32>
    %cst_45 = arith.constant 9.99999974E-6 : f32
    %152 = vector.broadcast %cst_45 : f32 to vector<16x1xf32>
    %153 = arith.addf %149, %152 : vector<16x1xf32>
    %154 = math.rsqrt %153 : vector<16x1xf32>
    %155 = vector.broadcast %154 : vector<16x1xf32> to vector<16x32xf32>
    %156 = arith.mulf %151, %155 : vector<16x32xf32>
    %157 = vector.broadcast %22 : vector<1x32xf32> to vector<16x32xf32>
    %158 = arith.mulf %156, %157 : vector<16x32xf32>
    %159 = vector.broadcast %23 : vector<1x32xf32> to vector<16x32xf32>
    %160 = arith.addf %158, %159 : vector<16x32xf32>
    %c1 = arith.constant 1 : index
    %c0_46 = arith.constant 0 : index
    %c0_47 = arith.constant 0 : index
    %161 = vector.load %arg2[%c1, %c0_46, %c0_47] : memref<2x32x192xf32, #tpu.memory_space<vmem>>, vector<1x32x192xf32>
    %162 = vector.shape_cast %161 : vector<1x32x192xf32> to vector<32x192xf32>
    %c1_48 = arith.constant 1 : index
    %c0_49 = arith.constant 0 : index
    %c0_50 = arith.constant 0 : index
    %163 = vector.load %arg3[%c1_48, %c0_49, %c0_50] : memref<2x3x128xf32, #tpu.memory_space<vmem>>, vector<1x3x128xf32>
    %164 = vector.shape_cast %163 : vector<1x3x128xf32> to vector<3x128xf32>
    %165 = vector.extract_strided_slice %164 {offsets = [0, 0], sizes = [1, 96], strides = [1, 1]} : vector<3x128xf32> to vector<1x96xf32>
    %166 = vector.extract_strided_slice %164 {offsets = [0, 96], sizes = [1, 32], strides = [1, 1]} : vector<3x128xf32> to vector<1x32xf32>
    %167 = vector.extract_strided_slice %164 {offsets = [1, 0], sizes = [1, 32], strides = [1, 1]} : vector<3x128xf32> to vector<1x32xf32>
    %168 = vector.extract_strided_slice %164 {offsets = [1, 32], sizes = [1, 32], strides = [1, 1]} : vector<3x128xf32> to vector<1x32xf32>
    %169 = vector.extract_strided_slice %164 {offsets = [1, 64], sizes = [1, 32], strides = [1, 1]} : vector<3x128xf32> to vector<1x32xf32>
    %170 = vector.extract_strided_slice %164 {offsets = [1, 96], sizes = [1, 32], strides = [1, 1]} : vector<3x128xf32> to vector<1x32xf32>
    %171 = vector.extract_strided_slice %164 {offsets = [2, 0], sizes = [1, 32], strides = [1, 1]} : vector<3x128xf32> to vector<1x32xf32>
    %172 = vector.extract_strided_slice %164 {offsets = [2, 32], sizes = [1, 32], strides = [1, 1]} : vector<3x128xf32> to vector<1x32xf32>
    %173 = vector.extract_strided_slice %162 {offsets = [0, 96], sizes = [32, 32], strides = [1, 1]} : vector<32x192xf32> to vector<32x32xf32>
    %174 = vector.extract_strided_slice %162 {offsets = [0, 128], sizes = [32, 32], strides = [1, 1]} : vector<32x192xf32> to vector<32x32xf32>
    %175 = vector.extract_strided_slice %162 {offsets = [0, 160], sizes = [32, 32], strides = [1, 1]} : vector<32x192xf32> to vector<32x32xf32>
    %176 = vector.extract_strided_slice %162 {offsets = [0, 0], sizes = [32, 96], strides = [1, 1]} : vector<32x192xf32> to vector<32x96xf32>
    %cst_51 = arith.constant dense<0.000000e+00> : vector<16x96xf32>
    %177 = tpu.matmul %160, %176, %cst_51 {dimension_numbers = #tpu.dot_dimension_numbers<[1], [0], [0], [1], [0, 0, 1, 1], [], []>} : vector<16x32xf32>, vector<32x96xf32>, vector<16x96xf32> -> vector<16x96xf32>
    %178 = vector.broadcast %165 : vector<1x96xf32> to vector<16x96xf32>
    %179 = arith.addf %177, %178 : vector<16x96xf32>
    %180 = vector.extract_strided_slice %179 {offsets = [0, 0], sizes = [16, 8], strides = [1, 1]} : vector<16x96xf32> to vector<16x8xf32>
    %181 = vector.extract_strided_slice %179 {offsets = [0, 32], sizes = [16, 8], strides = [1, 1]} : vector<16x96xf32> to vector<16x8xf32>
    %182 = vector.extract_strided_slice %179 {offsets = [0, 64], sizes = [16, 8], strides = [1, 1]} : vector<16x96xf32> to vector<16x8xf32>
    %cst_52 = arith.constant dense<0.000000e+00> : vector<16x16xf32>
    %183 = tpu.matmul %180, %181, %cst_52 {dimension_numbers = #tpu.dot_dimension_numbers<[1], [1], [0], [0], [0, 0, 1, 0], [], []>} : vector<16x8xf32>, vector<16x8xf32>, vector<16x16xf32> -> vector<16x16xf32>
    %cst_53 = arith.constant 0.353553385 : f32
    %184 = vector.broadcast %cst_53 : f32 to vector<16x16xf32>
    %185 = arith.mulf %183, %184 : vector<16x16xf32>
    %186 = arith.addf %185, %10 : vector<16x16xf32>
    %cst_54 = arith.constant dense<0xFF800000> : vector<16xf32>
    %187 = vector.multi_reduction <maximumf>, %186, %cst_54 [1] : vector<16x16xf32> to vector<16xf32>
    %188 = vector.shape_cast %187 : vector<16xf32> to vector<16x1xf32>
    %189 = vector.broadcast %188 : vector<16x1xf32> to vector<16x16xf32>
    %190 = arith.subf %186, %189 : vector<16x16xf32>
    %191 = math.exp %190 : vector<16x16xf32>
    %cst_55 = arith.constant dense<0.000000e+00> : vector<16xf32>
    %192 = vector.multi_reduction <add>, %191, %cst_55 [1] : vector<16x16xf32> to vector<16xf32>
    %193 = vector.shape_cast %192 : vector<16xf32> to vector<16x1xf32>
    %194 = tpu.reciprocal %193 {approx = true} : vector<16x1xf32> -> vector<16x1xf32>
    %195 = vector.broadcast %194 : vector<16x1xf32> to vector<16x16xf32>
    %196 = arith.mulf %191, %195 : vector<16x16xf32>
    %cst_56 = arith.constant dense<0.000000e+00> : vector<16x8xf32>
    %197 = tpu.matmul %196, %182, %cst_56 {dimension_numbers = #tpu.dot_dimension_numbers<[1], [0], [0], [1], [0, 0, 1, 1], [], []>} : vector<16x16xf32>, vector<16x8xf32>, vector<16x8xf32> -> vector<16x8xf32>
    %198 = vector.extract_strided_slice %179 {offsets = [0, 8], sizes = [16, 8], strides = [1, 1]} : vector<16x96xf32> to vector<16x8xf32>
    %199 = vector.extract_strided_slice %179 {offsets = [0, 40], sizes = [16, 8], strides = [1, 1]} : vector<16x96xf32> to vector<16x8xf32>
    %200 = vector.extract_strided_slice %179 {offsets = [0, 72], sizes = [16, 8], strides = [1, 1]} : vector<16x96xf32> to vector<16x8xf32>
    %cst_57 = arith.constant dense<0.000000e+00> : vector<16x16xf32>
    %201 = tpu.matmul %198, %199, %cst_57 {dimension_numbers = #tpu.dot_dimension_numbers<[1], [1], [0], [0], [0, 0, 1, 0], [], []>} : vector<16x8xf32>, vector<16x8xf32>, vector<16x16xf32> -> vector<16x16xf32>
    %cst_58 = arith.constant 0.353553385 : f32
    %202 = vector.broadcast %cst_58 : f32 to vector<16x16xf32>
    %203 = arith.mulf %201, %202 : vector<16x16xf32>
    %204 = arith.addf %203, %10 : vector<16x16xf32>
    %cst_59 = arith.constant dense<0xFF800000> : vector<16xf32>
    %205 = vector.multi_reduction <maximumf>, %204, %cst_59 [1] : vector<16x16xf32> to vector<16xf32>
    %206 = vector.shape_cast %205 : vector<16xf32> to vector<16x1xf32>
    %207 = vector.broadcast %206 : vector<16x1xf32> to vector<16x16xf32>
    %208 = arith.subf %204, %207 : vector<16x16xf32>
    %209 = math.exp %208 : vector<16x16xf32>
    %cst_60 = arith.constant dense<0.000000e+00> : vector<16xf32>
    %210 = vector.multi_reduction <add>, %209, %cst_60 [1] : vector<16x16xf32> to vector<16xf32>
    %211 = vector.shape_cast %210 : vector<16xf32> to vector<16x1xf32>
    %212 = tpu.reciprocal %211 {approx = true} : vector<16x1xf32> -> vector<16x1xf32>
    %213 = vector.broadcast %212 : vector<16x1xf32> to vector<16x16xf32>
    %214 = arith.mulf %209, %213 : vector<16x16xf32>
    %cst_61 = arith.constant dense<0.000000e+00> : vector<16x8xf32>
    %215 = tpu.matmul %214, %200, %cst_61 {dimension_numbers = #tpu.dot_dimension_numbers<[1], [0], [0], [1], [0, 0, 1, 1], [], []>} : vector<16x16xf32>, vector<16x8xf32>, vector<16x8xf32> -> vector<16x8xf32>
    %216 = vector.extract_strided_slice %179 {offsets = [0, 16], sizes = [16, 8], strides = [1, 1]} : vector<16x96xf32> to vector<16x8xf32>
    %217 = vector.extract_strided_slice %179 {offsets = [0, 48], sizes = [16, 8], strides = [1, 1]} : vector<16x96xf32> to vector<16x8xf32>
    %218 = vector.extract_strided_slice %179 {offsets = [0, 80], sizes = [16, 8], strides = [1, 1]} : vector<16x96xf32> to vector<16x8xf32>
    %cst_62 = arith.constant dense<0.000000e+00> : vector<16x16xf32>
    %219 = tpu.matmul %216, %217, %cst_62 {dimension_numbers = #tpu.dot_dimension_numbers<[1], [1], [0], [0], [0, 0, 1, 0], [], []>} : vector<16x8xf32>, vector<16x8xf32>, vector<16x16xf32> -> vector<16x16xf32>
    %cst_63 = arith.constant 0.353553385 : f32
    %220 = vector.broadcast %cst_63 : f32 to vector<16x16xf32>
    %221 = arith.mulf %219, %220 : vector<16x16xf32>
    %222 = arith.addf %221, %10 : vector<16x16xf32>
    %cst_64 = arith.constant dense<0xFF800000> : vector<16xf32>
    %223 = vector.multi_reduction <maximumf>, %222, %cst_64 [1] : vector<16x16xf32> to vector<16xf32>
    %224 = vector.shape_cast %223 : vector<16xf32> to vector<16x1xf32>
    %225 = vector.broadcast %224 : vector<16x1xf32> to vector<16x16xf32>
    %226 = arith.subf %222, %225 : vector<16x16xf32>
    %227 = math.exp %226 : vector<16x16xf32>
    %cst_65 = arith.constant dense<0.000000e+00> : vector<16xf32>
    %228 = vector.multi_reduction <add>, %227, %cst_65 [1] : vector<16x16xf32> to vector<16xf32>
    %229 = vector.shape_cast %228 : vector<16xf32> to vector<16x1xf32>
    %230 = tpu.reciprocal %229 {approx = true} : vector<16x1xf32> -> vector<16x1xf32>
    %231 = vector.broadcast %230 : vector<16x1xf32> to vector<16x16xf32>
    %232 = arith.mulf %227, %231 : vector<16x16xf32>
    %cst_66 = arith.constant dense<0.000000e+00> : vector<16x8xf32>
    %233 = tpu.matmul %232, %218, %cst_66 {dimension_numbers = #tpu.dot_dimension_numbers<[1], [0], [0], [1], [0, 0, 1, 1], [], []>} : vector<16x16xf32>, vector<16x8xf32>, vector<16x8xf32> -> vector<16x8xf32>
    %234 = vector.extract_strided_slice %179 {offsets = [0, 24], sizes = [16, 8], strides = [1, 1]} : vector<16x96xf32> to vector<16x8xf32>
    %235 = vector.extract_strided_slice %179 {offsets = [0, 56], sizes = [16, 8], strides = [1, 1]} : vector<16x96xf32> to vector<16x8xf32>
    %236 = vector.extract_strided_slice %179 {offsets = [0, 88], sizes = [16, 8], strides = [1, 1]} : vector<16x96xf32> to vector<16x8xf32>
    %cst_67 = arith.constant dense<0.000000e+00> : vector<16x16xf32>
    %237 = tpu.matmul %234, %235, %cst_67 {dimension_numbers = #tpu.dot_dimension_numbers<[1], [1], [0], [0], [0, 0, 1, 0], [], []>} : vector<16x8xf32>, vector<16x8xf32>, vector<16x16xf32> -> vector<16x16xf32>
    %cst_68 = arith.constant 0.353553385 : f32
    %238 = vector.broadcast %cst_68 : f32 to vector<16x16xf32>
    %239 = arith.mulf %237, %238 : vector<16x16xf32>
    %240 = arith.addf %239, %10 : vector<16x16xf32>
    %cst_69 = arith.constant dense<0xFF800000> : vector<16xf32>
    %241 = vector.multi_reduction <maximumf>, %240, %cst_69 [1] : vector<16x16xf32> to vector<16xf32>
    %242 = vector.shape_cast %241 : vector<16xf32> to vector<16x1xf32>
    %243 = vector.broadcast %242 : vector<16x1xf32> to vector<16x16xf32>
    %244 = arith.subf %240, %243 : vector<16x16xf32>
    %245 = math.exp %244 : vector<16x16xf32>
    %cst_70 = arith.constant dense<0.000000e+00> : vector<16xf32>
    %246 = vector.multi_reduction <add>, %245, %cst_70 [1] : vector<16x16xf32> to vector<16xf32>
    %247 = vector.shape_cast %246 : vector<16xf32> to vector<16x1xf32>
    %248 = tpu.reciprocal %247 {approx = true} : vector<16x1xf32> -> vector<16x1xf32>
    %249 = vector.broadcast %248 : vector<16x1xf32> to vector<16x16xf32>
    %250 = arith.mulf %245, %249 : vector<16x16xf32>
    %cst_71 = arith.constant dense<0.000000e+00> : vector<16x8xf32>
    %251 = tpu.matmul %250, %236, %cst_71 {dimension_numbers = #tpu.dot_dimension_numbers<[1], [0], [0], [1], [0, 0, 1, 1], [], []>} : vector<16x16xf32>, vector<16x8xf32>, vector<16x8xf32> -> vector<16x8xf32>
    %252 = tpu.concatenate %197, %215, %233, %251 in 1 : vector<16x8xf32>, vector<16x8xf32>, vector<16x8xf32>, vector<16x8xf32> -> vector<16x32xf32>
    %cst_72 = arith.constant dense<0.000000e+00> : vector<16x32xf32>
    %253 = tpu.matmul %252, %173, %cst_72 {dimension_numbers = #tpu.dot_dimension_numbers<[1], [0], [0], [1], [0, 0, 1, 1], [], []>} : vector<16x32xf32>, vector<32x32xf32>, vector<16x32xf32> -> vector<16x32xf32>
    %254 = vector.broadcast %166 : vector<1x32xf32> to vector<16x32xf32>
    %255 = arith.addf %253, %254 : vector<16x32xf32>
    %256 = arith.addf %160, %255 : vector<16x32xf32>
    %cst_73 = arith.constant dense<0.000000e+00> : vector<16xf32>
    %257 = vector.multi_reduction <add>, %256, %cst_73 [1] : vector<16x32xf32> to vector<16xf32>
    %258 = vector.shape_cast %257 : vector<16xf32> to vector<16x1xf32>
    %cst_74 = arith.constant 3.200000e+01 : f32
    %259 = vector.broadcast %cst_74 : f32 to vector<16x1xf32>
    %260 = arith.divf %258, %259 : vector<16x1xf32>
    %261 = arith.mulf %256, %256 : vector<16x32xf32>
    %cst_75 = arith.constant dense<0.000000e+00> : vector<16xf32>
    %262 = vector.multi_reduction <add>, %261, %cst_75 [1] : vector<16x32xf32> to vector<16xf32>
    %263 = vector.shape_cast %262 : vector<16xf32> to vector<16x1xf32>
    %cst_76 = arith.constant 3.200000e+01 : f32
    %264 = vector.broadcast %cst_76 : f32 to vector<16x1xf32>
    %265 = arith.divf %263, %264 : vector<16x1xf32>
    %266 = arith.mulf %260, %260 : vector<16x1xf32>
    %267 = arith.subf %265, %266 : vector<16x1xf32>
    %268 = vector.broadcast %260 : vector<16x1xf32> to vector<16x32xf32>
    %269 = arith.subf %256, %268 : vector<16x32xf32>
    %cst_77 = arith.constant 9.99999974E-6 : f32
    %270 = vector.broadcast %cst_77 : f32 to vector<16x1xf32>
    %271 = arith.addf %267, %270 : vector<16x1xf32>
    %272 = math.rsqrt %271 : vector<16x1xf32>
    %273 = vector.broadcast %272 : vector<16x1xf32> to vector<16x32xf32>
    %274 = arith.mulf %269, %273 : vector<16x32xf32>
    %275 = vector.broadcast %169 : vector<1x32xf32> to vector<16x32xf32>
    %276 = arith.mulf %274, %275 : vector<16x32xf32>
    %277 = vector.broadcast %170 : vector<1x32xf32> to vector<16x32xf32>
    %278 = arith.addf %276, %277 : vector<16x32xf32>
    %cst_78 = arith.constant dense<0.000000e+00> : vector<16x32xf32>
    %279 = tpu.matmul %278, %174, %cst_78 {dimension_numbers = #tpu.dot_dimension_numbers<[1], [0], [0], [1], [0, 0, 1, 1], [], []>} : vector<16x32xf32>, vector<32x32xf32>, vector<16x32xf32> -> vector<16x32xf32>
    %280 = vector.broadcast %167 : vector<1x32xf32> to vector<16x32xf32>
    %281 = arith.addf %279, %280 : vector<16x32xf32>
    %cst_79 = arith.constant 0.000000e+00 : f32
    %282 = vector.broadcast %cst_79 : f32 to vector<16x32xf32>
    %283 = arith.maximumf %281, %282 : vector<16x32xf32>
    %cst_80 = arith.constant dense<0.000000e+00> : vector<16x32xf32>
    %284 = tpu.matmul %283, %175, %cst_80 {dimension_numbers = #tpu.dot_dimension_numbers<[1], [0], [0], [1], [0, 0, 1, 1], [], []>} : vector<16x32xf32>, vector<32x32xf32>, vector<16x32xf32> -> vector<16x32xf32>
    %285 = vector.broadcast %168 : vector<1x32xf32> to vector<16x32xf32>
    %286 = arith.addf %284, %285 : vector<16x32xf32>
    %287 = arith.addf %278, %286 : vector<16x32xf32>
    %cst_81 = arith.constant dense<0.000000e+00> : vector<16xf32>
    %288 = vector.multi_reduction <add>, %287, %cst_81 [1] : vector<16x32xf32> to vector<16xf32>
    %289 = vector.shape_cast %288 : vector<16xf32> to vector<16x1xf32>
    %cst_82 = arith.constant 3.200000e+01 : f32
    %290 = vector.broadcast %cst_82 : f32 to vector<16x1xf32>
    %291 = arith.divf %289, %290 : vector<16x1xf32>
    %292 = arith.mulf %287, %287 : vector<16x32xf32>
    %cst_83 = arith.constant dense<0.000000e+00> : vector<16xf32>
    %293 = vector.multi_reduction <add>, %292, %cst_83 [1] : vector<16x32xf32> to vector<16xf32>
    %294 = vector.shape_cast %293 : vector<16xf32> to vector<16x1xf32>
    %cst_84 = arith.constant 3.200000e+01 : f32
    %295 = vector.broadcast %cst_84 : f32 to vector<16x1xf32>
    %296 = arith.divf %294, %295 : vector<16x1xf32>
    %297 = arith.mulf %291, %291 : vector<16x1xf32>
    %298 = arith.subf %296, %297 : vector<16x1xf32>
    %299 = vector.broadcast %291 : vector<16x1xf32> to vector<16x32xf32>
    %300 = arith.subf %287, %299 : vector<16x32xf32>
    %cst_85 = arith.constant 9.99999974E-6 : f32
    %301 = vector.broadcast %cst_85 : f32 to vector<16x1xf32>
    %302 = arith.addf %298, %301 : vector<16x1xf32>
    %303 = math.rsqrt %302 : vector<16x1xf32>
    %304 = vector.broadcast %303 : vector<16x1xf32> to vector<16x32xf32>
    %305 = arith.mulf %300, %304 : vector<16x32xf32>
    %306 = vector.broadcast %171 : vector<1x32xf32> to vector<16x32xf32>
    %307 = arith.mulf %305, %306 : vector<16x32xf32>
    %308 = vector.broadcast %172 : vector<1x32xf32> to vector<16x32xf32>
    %309 = arith.addf %307, %308 : vector<16x32xf32>
    %c0_86 = arith.constant 0 : index
    %c0_87 = arith.constant 0 : index
    %310 = vector.load %arg5[%c0_86, %c0_87] : memref<32x18xf32, #tpu.memory_space<vmem>>, vector<32x18xf32>
    %311 = vector.extract_strided_slice %310 {offsets = [0, 0], sizes = [2, 16], strides = [1, 1]} : vector<32x18xf32> to vector<2x16xf32>
    %312 = vector.extract_strided_slice %310 {offsets = [0, 16], sizes = [32, 1], strides = [1, 1]} : vector<32x18xf32> to vector<32x1xf32>
    %313 = vector.extract_strided_slice %310 {offsets = [0, 17], sizes = [1, 1], strides = [1, 1]} : vector<32x18xf32> to vector<1x1xf32>
    %cst_88 = arith.constant dense<0.000000e+00> : vector<2x32xf32>
    %314 = tpu.matmul %311, %309, %cst_88 {dimension_numbers = #tpu.dot_dimension_numbers<[1], [0], [0], [1], [0, 0, 1, 1], [], []>} : vector<2x16xf32>, vector<16x32xf32>, vector<2x32xf32> -> vector<2x32xf32>
    %cst_89 = arith.constant dense<0.000000e+00> : vector<2x1xf32>
    %315 = tpu.matmul %314, %312, %cst_89 {dimension_numbers = #tpu.dot_dimension_numbers<[1], [0], [0], [1], [0, 0, 1, 1], [], []>} : vector<2x32xf32>, vector<32x1xf32>, vector<2x1xf32> -> vector<2x1xf32>
    %316 = vector.broadcast %313 : vector<1x1xf32> to vector<2x1xf32>
    %317 = arith.addf %315, %316 : vector<2x1xf32>
    %c0_90 = arith.constant 0 : index
    %c0_91 = arith.constant 0 : index
    %318 = vector.load %arg6[%c0_90, %c0_91] : memref<2x1xf32, #tpu.memory_space<vmem>>, vector<2x1xf32>
    tpu.vector_store %arg6[%c0_90, %c0_91], %317 {strides = array<i32>} : memref<2x1xf32, #tpu.memory_space<vmem>>, vector<2x1xf32>,
    return
  }
}

</mosaic_0001>

<bundles_post_ra>
// kernel: text_classifier_forward.1
= control target key start
LH: loop header
LB: loop body
LE: loop exit
PB: predicated region body
PF: predicated region fallthrough
CT: control target
= control target key end

     0   :  { %v3839_v0 = vmov 0   ;;  %v25_v31 = vlaneseq  ;;  %v3840_v34 = vmov 1.0   ;;  %vm145_vm2 = vcmask 261120   ;;  %s3841_s18 = smov 96   ;;  %s3842_s20 = smov 88   ;;  %s4437_s0 = inlined_call_operand.vmem [shape: s32[16,1], index: 0, kind: input, shape index: {}]   ;;  %s4438_s1 = inlined_call_operand.vmem [shape: f32[128,32], index: 1, kind: input, shape index: {}]   ;;  %s4439_s2 = inlined_call_operand.vmem [shape: f32[2,32,192], index: 2, kind: input, shape index: {}]   ;;  %s4440_s4 = inlined_call_operand.vmem [shape: f32[16,48], index: 4, kind: input, shape index: {}]   ;;  %s4441_s3 = inlined_call_operand.vmem [shape: f32[2,3,128], index: 3, kind: input, shape index: {}]   ;;  %s4442_s5 = inlined_call_operand.vmem [shape: f32[32,18], index: 5, kind: input, shape index: {}]   ;;  %s4443_s6 = inlined_call_operand.vmem [shape: f32[2,1], index: 6, kind: output, shape index: {}]  }
   0x1   :  { %3628 = vset.pattern.permute.xlu0 %v3839_v0  ;;  %v23_v1 = vld [vmem:[%s4437_s0] sm:$0xff]  ;;  %v40_v3 = vld [vmem:[%s4438_s1 + $0x8] sm:$0xff]  ;;  %v41_v4 = vld [vmem:[%s4438_s1 + $0x10] sm:$0xff]  ;;  %vm233_vm3 = vcmask 64512   ;;  %vm329_vm5 = vcmask 130048   ;;  %s3843_s21 = smov 120  }
   0x2   :  { %v39_v2 = vld [vmem:[%s4438_s1] sm:$0xff]  ;;  %28 = vperm.xlu0 %3628, %v23_v1   ;;  %v42_v5 = vld [vmem:[%s4438_s1 + $0x18] sm:$0xff]  ;;  %v24_v6 = vld [vmem:[%s4437_s0 + $0x8] sm:$0xff]  ;;  %v26_v32 = vand.u32 127, %v25_v31  ;;  %v3990_v45 = vshrl.u32 %v25_v31, 7  ;;  %s3844_s22 = smov 64  }
   0x3   :  { %v3422_v7 = vpack.c.bf16 %v40_v3, %v39_v2  ;;  %v3426_v8 = vpack.c.bf16 %v42_v5, %v41_v4  ;;  %v43_v9 = vld [vmem:[%s4438_s1 + $0x20] sm:$0xff]  ;;  %v44_v10 = vld [vmem:[%s4438_s1 + $0x28] sm:$0xff]  ;;  %v45_v12 = vld [vmem:[%s4438_s1 + $0x30] sm:$0xff]  ;;  %s3845_s23 = smov 80   ;;  %s3846_s24 = smov 112   ;;  %vm1079_vm6 = vcmask 195584  }
   0x4   :  { %v3430_v11 = vpack.c.bf16 %v44_v10, %v43_v9  ;;  %v46_v13 = vld [vmem:[%s4438_s1 + $0x38] sm:$0xff]  ;;  %v3928_v14 = vld [vmem:[%s4439_s2] sm:$0xff]  ;;  %v3933_v15 = vld [vmem:[%s4439_s2 + $0x10] sm:$0xff]  ;;  %v3993_v46 = vsub.s32 0, %v3990_v45  ;;  %s3847_s25 = smov 56   ;;  %s3848_s26 = smov 48  }
   0x5   :  { %3423 = vmatprep.subr.bf16.mxu0 %v3422_v7  ;;  %v3669_v16 = vpack.i.bf16 %v3933_v15, %v3928_v14  ;;  %v3454_v17 = vpack.c.bf16 %v3933_v15, %v3928_v14  ;;  %v3434_v18 = vpack.c.bf16 %v46_v13, %v45_v12  ;;  %v47_v19 = vld [vmem:[%s4438_s1 + $0x40] sm:$0xff]  ;;  %v48_v20 = vld [vmem:[%s4438_s1 + $0x48] sm:$0xff]  ;;  %v49_v22 = vld [vmem:[%s4438_s1 + $0x50] sm:$0xff]  ;;  %s3849_s27 = smov 104   ;;  %s3850_s28 = smov 72   ;;  %vm3857_vm7 = vmmov 0  }
   0x6   :  { %31 = vperm.xlu0 %3628, %v24_v6   ;;  %3425 = vmatpush3.bf16.msra.mxu0 %v3422_v7  ;;  %v3438_v21 = vpack.c.bf16 %v48_v20, %v47_v19  ;;  %v50_v23 = vld [vmem:[%s4438_s1 + $0x58] sm:$0xff]  ;;  %v51_v25 = vld [vmem:[%s4438_s1 + $0x60] sm:$0xff]  ;;  %v52_v26 = vld [vmem:[%s4438_s1 + $0x68] sm:$0xff]  ;;  %s3851_s29 = smov 32   ;;  %s3852_s30 = smov 40   ;;  %vm2946_vm8 = vcmask 1024  }
   0x7   :  { %3427 = vmatprep.subr.bf16.mxu0 %v3426_v8  ;;  %3455 = vmatprep.subr.bf16.mxu1 %v3454_v17  ;;  %v3442_v24 = vpack.c.bf16 %v50_v23, %v49_v22  ;;  %v3446_v27 = vpack.c.bf16 %v52_v26, %v51_v25  ;;  %v53_v28 = vld [vmem:[%s4438_s1 + $0x70] sm:$0xff]  ;;  %v54_v29 = vld [vmem:[%s4438_s1 + $0x78] sm:$0xff]  ;;  %v3966_v36 = vld [vmem:[%s4439_s2 + $0x20] sm:$0xff]  ;;  %s3853_s7 = smov 8   ;;  %s3854_s8 = smov 16  }
   0x8   :  { %3457 = vmatpush3.bf16.msra.mxu1 %v3454_v17  ;;  %v3450_v30 = vpack.c.bf16 %v54_v29, %v53_v28  ;;  %v3971_v37 = vld [vmem:[%s4439_s2 + $0x30] sm:$0xff]  ;;  %v55_v39 = vld [vmem:[%s4440_s4] sm:$0xff]  ;;  %v56_v40 = vld [vmem:[%s4440_s4 + $0x8] sm:$0xff]  ;;  %s3855_s9 = smov 24  }
   0x9   :  { %v3458_v38 = vpack.c.bf16 %v3971_v37, %v3966_v36  ;;  %v3998_v47 = vld [vmem:[%s4441_s3] sm:$0x7]  ;;  %vm4021_vm4 = vmpackc.low %vm233_vm3, %vm233_vm3 }
   0xa   :  { %3429 = vmatpush3.bf16.msra.mxu0 %v3426_v8  ;;  %323 = vrot.lane.b32.xlu0 %v56_v40, %s3841_s18  ;;  %v4002_v48 = vrot.slane %v3998_v47, %v3993_v46 }
   0xb   :  { %3431 = vmatprep.subr.bf16.mxu0 %v3430_v11  ;;  %3459 = vmatprep.subr.bf16.mxu1 %v3458_v38 }
   0xc   :  { %3461 = vmatpush3.bf16.msra.mxu1 %v3458_v38 }
   0xe   :  { %3433 = vmatpush3.bf16.msra.mxu0 %v3430_v11 }
   0xf   :  { %3435 = vmatprep.subr.bf16.mxu0 %v3434_v18 }
  0x12   :  { %3437 = vmatpush3.bf16.msra.mxu0 %v3434_v18 }
  0x13   :  { %3439 = vmatprep.subr.bf16.mxu0 %v3438_v21 }
  0x16   :  { %3441 = vmatpush3.bf16.msra.mxu0 %v3438_v21 }
  0x17   :  { %3443 = vmatprep.subr.bf16.mxu0 %v3442_v24 }
  0x1a   :  { %3445 = vmatpush3.bf16.msra.mxu0 %v3442_v24 }
  0x1b   :  { %3447 = vmatprep.subr.bf16.mxu0 %v3446_v27 }
  0x1e   :  { %3449 = vmatpush3.bf16.msra.mxu0 %v3446_v27 }
  0x1f   :  { %3451 = vmatprep.subr.bf16.mxu0 %v3450_v30 }
  0x22   :  { %3453 = vmatpush3.bf16.msra.mxu0 %v3450_v30 }
  0x81   :  { %v29_v33 = vpop.permute.xlu0 %28 }
  0x82   :  { %vm33_vm0 = vcmp.eq.s32.totalorder %v26_v32, %v29_v33 }
  0x83   :  { %3201 = vmatprep.mubr.msk.f32.mxu0 %vm33_vm0, %v3840_v34 }
  0x85   :  { %v32_v35 = vpop.permute.xlu0 %31 }
  0x86   :  { %vm34_vm1 = vcmp.eq.s32.totalorder %v26_v32, %v32_v35 }
  0x87   :  { %3202 = vmatmul.mubr.msk.f32.vlgmr.msra.gmra.mrb[0].mxu0 %vm34_vm1, %v3840_v34 }
  0x89   :  { %v4031_v60 = vpop.permute.xlu0 %323 }
 0x15a   :  { %v3203_v41 = vpop.f32.mrb[0].mxu0 }
 0x15b   :  { %v123_v42 = vpop.f32.mrb[1].mxu0  ;;  %v3983_v44 = vadd.f32 %v3203_v41, %v56_v40 }
 0x15c   :  { %v3981_v43 = vadd.f32 %v123_v42, %v55_v39 }
 0x15e   :  { %3212 = vmatprep.mubr.msk.f32.mxu1 %vm145_vm2, %v3981_v43 }
 0x15f   :  { %3213 = vmatmul.mubr.msk.f32.vlgmr.msra.gmra.mrb[0].mxu1 %vm145_vm2, %v3983_v44 }
 0x232   :  { %v3214_v49 = vpop.f32.mrb[0].mxu1 }
 0x233   :  { %v4005_v50 = vadd.f32 %v3214_v49, %v4002_v48  ;;  %v218_v51 = vpop.f32.mrb[1].mxu1 }
 0x234   :  { %v4008_v52 = vadd.f32 %v218_v51, %v4002_v48 }
 0x236   :  { %3219 = vmatprep.mubr.msk.f32.mxu1 %vm233_vm3, %v4008_v52  ;;  %v4014_v53 = vpack.i.bf16 %v4005_v50, %v4008_v52 }
 0x238   :  { %3630 = vrot.lane.b32.xlu1 %v4014_v53, %s3841_s18 }
 0x23c   :  { %321 = vrot.lane.b32.xlu1 %v55_v39, %s3841_s18 }
 0x2aa   :  { %v3631_v54 = vpop.permute.xlu1 %3630 }
 0x2ab   :  { %v3633_v55 = vunpack.i.h.bf16 %v3631_v54  ;;  %v3632_v56 = vunpack.i.l.bf16 %v3631_v54 }
 0x2ad   :  { %v3462_v58 = vpack.c.bf16 %v3633_v55, %v3632_v56 }
 0x2ae   :  { %v4033_v63 = vpop.permute.xlu1 %321 }
 0x2af   :  { %3464 = vmatprep.subr.msk.bf16.mxu1 %vm4021_vm4, %v3462_v58 }
 0x2b0   :  { %3467 = vmatpush3.bf16.xpose.msk.msra.mxu1 %vm4021_vm4, %v3462_v58 }
 0x2b7   :  { %3220 = vmatmul.mubr.msk.f32.vlgmr.msra.gmra.mrb[2].mxu1 %vm233_vm3, %v4005_v50 }
 0x38a   :  { %v3221_v59 = vpop.f32.mrb[2].mxu1 }
 0x38b   :  { %v318_v61 = vmul.f32 0.35355338, %v3221_v59  ;;  %v308_v62 = vpop.f32.mrb[3].mxu1 }
 0x38c   :  { %v317_v0 = vmul.f32 0.35355338, %v308_v62 }
 0x38d   :  { %v328_v1 = vadd.f32 %v4031_v60, %v318_v61 }
 0x38e   :  { %v327_v2 = vadd.f32 %v4033_v63, %v317_v0 }
 0x38f   :  { %v333_v3 = vsel %vm329_vm5, %v328_v1, -inf }
 0x390   :  { %334 = vmax.xlane.f32.xlu0 %v333_v3  ;;  %v330_v4 = vsel %vm329_vm5, %v327_v2, -inf }
 0x391   :  { %331 = vmax.xlane.f32.xlu1 %v330_v4 }
 0x41d   :  { %v335_v5 = vpop.xlane.xlu0 %334 }
 0x41e   :  { %v337_v6 = vsub.f32 %v328_v1, %v335_v5  ;;  %v332_v7 = vpop.xlane.xlu1 %331 }
 0x41f   :  { %v336_v8 = vsub.f32 %v327_v2, %v332_v7 }
 0x420   :  { %v340_v9 = vmul.f32 1.442695, %v337_v6 }
 0x421   :  { %v338_v10 = vmul.f32 1.442695, %v336_v8 }
 0x422   :  { %3759 = vpow2.f32 %v340_v9 }
 0x423   :  { %3761 = vpow2.f32 %v338_v10 }
 0x42c   :  { %v3760_v11 = vpop.eup %3759 }
 0x42d   :  { %v3762_v12 = vpop.eup %3761  ;;  %v345_v13 = vsel %vm329_vm5, %v3760_v11, 0.0 }
 0x42e   :  { %346 = vadd.xlane.f32.xlu1 %v345_v13  ;;  %v342_v17 = vsel %vm329_vm5, %v3762_v12, 0.0 }
 0x42f   :  { %343 = vadd.xlane.f32.xlu0 %v342_v17 }
 0x43f   :  { %3640 = vrot.lane.b32.xlu1 %v4014_v53, %s3842_s20 }
 0x443   :  { %439 = vrot.lane.b32.xlu1 %v4008_v52, %s3843_s21 }
 0x445   :  { %3635 = vrot.lane.b32.xlu0 %v4014_v53, %s3844_s22 }
 0x447   :  { %441 = vrot.lane.b32.xlu1 %v4005_v50, %s3843_s21 }
 0x449   :  { %3645 = vrot.lane.b32.xlu0 %v4014_v53, %s3845_s23 }
 0x44b   :  { %645 = vrot.lane.b32.xlu1 %v4005_v50, %s3846_s24 }
 0x44d   :  { %643 = vrot.lane.b32.xlu0 %v4008_v52, %s3846_s24 }
 0x4bb   :  { %v347_v18 = vpop.xlane.xlu1 %346 }
 0x4bc   :  { %3763 = vrcp.f32 %v347_v18  ;;  %v344_v19 = vpop.xlane.xlu0 %343 }
 0x4bd   :  { %3765 = vrcp.f32 %v344_v19 }
 0x4bf   :  { %v3641_v20 = vpop.permute.xlu1 %3640 }
 0x4c0   :  { %v3636_v21 = vpop.permute.xlu0 %3635  ;;  %v3643_v22 = vunpack.i.h.bf16 %v3641_v20  ;;  %v3642_v23 = vunpack.i.l.bf16 %v3641_v20 }
 0x4c1   :  { %v3638_v24 = vunpack.i.h.bf16 %v3636_v21  ;;  %v3637_v25 = vunpack.i.l.bf16 %v3636_v21 }
 0x4c2   :  { %v3472_v29 = vpack.c.bf16 %v3643_v22, %v3642_v23 }
 0x4c3   :  { %v3468_v26 = vpack.c.bf16 %v3638_v24, %v3637_v25  ;;  %v440_v27 = vpop.permute.xlu1 %439 }
 0x4c4   :  { %v3646_v28 = vpop.permute.xlu0 %3645 }
 0x4c5   :  { %v3648_v30 = vunpack.i.h.bf16 %v3646_v28  ;;  %v3647_v31 = vunpack.i.l.bf16 %v3646_v28  ;;  %3469 = vmatprep.subr.bf16.mxu1 %v3468_v26 }
 0x4c6   :  { %v3764_v32 = vpop.eup %3763  ;;  %3471 = vmatpush3.bf16.msra.mxu1 %v3468_v26 }
 0x4c7   :  { %v3766_v33 = vpop.eup %3765  ;;  %v3482_v34 = vpack.c.bf16 %v3648_v30, %v3647_v31  ;;  %3474 = vmatprep.subr.msk.bf16.mxu1 %vm4021_vm4, %v3472_v29  ;;  %v351_v39 = vmul.f32 %v3764_v32, %v3760_v11  ;;  %v442_v40 = vpop.permute.xlu1 %441 }
 0x4c8   :  { %v644_v35 = vpop.permute.xlu0 %643  ;;  %v350_v38 = vmul.f32 %v3766_v33, %v3762_v12 }
 0x4c9   :  { %3484 = vmatprep.subr.msk.bf16.mxu0 %vm4021_vm4, %v3482_v34  ;;  %3247 = vmatprep.mubr.msk.f32.mxu0 %vm233_vm3, %v644_v35 }
 0x4ca   :  { %3226 = vmatprep.mubr.msk.f32.mxu1 %vm329_vm5, %v350_v38  ;;  %3487 = vmatpush3.bf16.xpose.msk.msra.mxu0 %vm4021_vm4, %v3482_v34 }
 0x4cb   :  { %3227 = vmatmul.mubr.msk.f32.vlgmr.msra.gmra.mrb[4].mxu1 %vm329_vm5, %v351_v39  ;;  %v646_v41 = vpop.permute.xlu1 %645 }
 0x4cc   :  { %3233 = vmatprep.mubr.msk.f32.mxu1 %vm233_vm3, %v440_v27 }
 0x4cf   :  { %3477 = vmatpush3.bf16.xpose.msk.msra.mxu1 %vm4021_vm4, %v3472_v29 }
 0x4d1   :  { %3248 = vmatmul.mubr.msk.f32.vlgmr.msra.gmra.mrb[2].mxu0 %vm233_vm3, %v646_v41 }
 0x4d6   :  { %3234 = vmatmul.mubr.msk.f32.vlgmr.msra.gmra.mrb[6].mxu1 %vm233_vm3, %v442_v40 }
 0x59e   :  { %v4069_v42 = vpop.f32.mrb[4].mxu1 }
 0x59f   :  { %v4071_v49 = vpop.f32.mrb[5].mxu1 }
 0x5a4   :  { %v3249_v51 = vpop.f32.mrb[2].mxu0 }
 0x5a5   :  { %v725_v54 = vpop.f32.mrb[3].mxu0  ;;  %v735_v2 = vmul.f32 0.35355338, %v3249_v51 }
 0x5a6   :  { %v734_v59 = vmul.f32 0.35355338, %v725_v54 }
 0x5a7   :  { %v737_v6 = vadd.f32 %v735_v2, %v4031_v60 }
 0x5a8   :  { %v736_v4 = vadd.f32 %v734_v59, %v4033_v63 }
 0x5a9   :  { %v3235_v55 = vpop.f32.mrb[6].mxu1  ;;  %v741_v7 = vsel %vm329_vm5, %v737_v6, -inf }
 0x5aa   :  { %v531_v56 = vmul.f32 0.35355338, %v3235_v55  ;;  %v521_v58 = vpop.f32.mrb[7].mxu1  ;;  %v738_v5 = vsel %vm329_vm5, %v736_v4, -inf }
 0x5ab   :  { %v530_v61 = vmul.f32 0.35355338, %v521_v58 }
 0x5ac   :  { %v533_v62 = vadd.f32 %v531_v56, %v4031_v60 }
 0x5ad   :  { %v532_v0 = vadd.f32 %v530_v61, %v4033_v63 }
 0x5ae   :  { %v537_v1 = vsel %vm329_vm5, %v533_v62, -inf }
 0x5af   :  { %538 = vmax.xlane.f32.xlu1 %v537_v1  ;;  %v534_v3 = vsel %vm329_vm5, %v532_v0, -inf }
 0x5b0   :  { %535 = vmax.xlane.f32.xlu0 %v534_v3 }
 0x5b4   :  { %739 = vmax.xlane.f32.xlu0 %v738_v5 }
 0x5b8   :  { %742 = vmax.xlane.f32.xlu0 %v741_v7 }
 0x63c   :  { %v539_v9 = vpop.xlane.xlu1 %538 }
 0x63d   :  { %v536_v8 = vpop.xlane.xlu0 %535  ;;  %v541_v12 = vsub.f32 %v533_v62, %v539_v9 }
 0x63e   :  { %v540_v27 = vsub.f32 %v532_v0, %v536_v8 }
 0x63f   :  { %v544_v19 = vmul.f32 1.442695, %v541_v12 }
 0x640   :  { %v542_v28 = vmul.f32 1.442695, %v540_v27 }
 0x641   :  { %v740_v10 = vpop.xlane.xlu0 %739 }
 0x642   :  { %v744_v11 = vsub.f32 %v736_v4, %v740_v10 }
 0x644   :  { %v746_v13 = vmul.f32 1.442695, %v744_v11 }
 0x645   :  { %v743_v17 = vpop.xlane.xlu0 %742 }
 0x646   :  { %3767 = vpow2.f32 %v746_v13  ;;  %v745_v18 = vsub.f32 %v737_v6, %v743_v17 }
 0x648   :  { %v748_v20 = vmul.f32 1.442695, %v745_v18 }
 0x64a   :  { %3769 = vpow2.f32 %v748_v20 }
 0x64b   :  { %3771 = vpow2.f32 %v544_v19 }
 0x64c   :  { %3773 = vpow2.f32 %v542_v28 }
 0x650   :  { %v3768_v21 = vpop.eup %3767 }
 0x651   :  { %v750_v22 = vsel %vm329_vm5, %v3768_v21, 0.0 }
 0x652   :  { %751 = vadd.xlane.f32.xlu1 %v750_v22 }
 0x654   :  { %v3770_v23 = vpop.eup %3769 }
 0x655   :  { %v753_v24 = vsel %vm329_vm5, %v3770_v23, 0.0  ;;  %v3772_v25 = vpop.eup %3771 }
 0x656   :  { %754 = vadd.xlane.f32.xlu0 %v753_v24  ;;  %v549_v26 = vsel %vm329_vm5, %v3772_v25, 0.0  ;;  %v3774_v29 = vpop.eup %3773 }
 0x657   :  { %v546_v30 = vsel %vm329_vm5, %v3774_v29, 0.0 }
 0x65a   :  { %550 = vadd.xlane.f32.xlu0 %v549_v26 }
 0x663   :  { %3650 = vrot.lane.b32.xlu1 %v4014_v53, %s3847_s25 }
 0x670   :  { %3655 = vrot.lane.b32.xlu0 %v4014_v53, %s3848_s26 }
 0x674   :  { %849 = vrot.lane.b32.xlu0 %v4005_v50, %s3849_s27 }
 0x687   :  { %547 = vadd.xlane.f32.xlu1 %v546_v30 }
 0x698   :  { %3660 = vrot.lane.b32.xlu1 %v4014_v53, %s3850_s28 }
 0x69c   :  { %847 = vrot.lane.b32.xlu1 %v4008_v52, %s3849_s27 }
 0x6df   :  { %v752_v31 = vpop.xlane.xlu1 %751 }
 0x6e0   :  { %3775 = vrcp.f32 %v752_v31 }
 0x6e3   :  { %v3651_v32 = vpop.permute.xlu1 %3650  ;;  %v755_v33 = vpop.xlane.xlu0 %754 }
 0x6e4   :  { %v3653_v34 = vunpack.i.h.bf16 %v3651_v32  ;;  %v3652_v35 = vunpack.i.l.bf16 %v3651_v32  ;;  %v3674_v32 = vpack.i.bf16 %v3971_v37, %v3966_v36 }
 0x6e6   :  { %v3478_v38 = vpack.c.bf16 %v3653_v34, %v3652_v35 }
 0x6e7   :  { %v551_v50 = vpop.xlane.xlu0 %550 }
 0x6e8   :  { %3479 = vmatprep.subr.bf16.mxu1 %v3478_v38  ;;  %3777 = vrcp.f32 %v551_v50 }
 0x6e9   :  { %3481 = vmatpush3.bf16.msra.mxu1 %v3478_v38 }
 0x6ea   :  { %v3776_v55 = vpop.eup %3775 }
 0x6eb   :  { %v3656_v39 = vpop.permute.xlu0 %3655  ;;  %v758_v2 = vmul.f32 %v3776_v55, %v3768_v21 }
 0x6ec   :  { %v3658_v40 = vunpack.i.h.bf16 %v3656_v39  ;;  %v3657_v41 = vunpack.i.l.bf16 %v3656_v39 }
 0x6ee   :  { %v3488_v51 = vpack.c.bf16 %v3658_v40, %v3657_v41 }
 0x6ef   :  { %v850_v6 = vpop.permute.xlu0 %849 }
 0x6f0   :  { %3489 = vmatprep.subr.bf16.mxu1 %v3488_v51 }
 0x6f2   :  { %v3778_v56 = vpop.eup %3777 }
 0x6f3   :  { %v555_v0 = vmul.f32 %v3778_v56, %v3772_v25 }
 0x714   :  { %v548_v54 = vpop.xlane.xlu1 %547 }
 0x715   :  { %3779 = vrcp.f32 %v548_v54 }
 0x716   :  { %3781 = vrcp.f32 %v755_v33 }
 0x718   :  { %v3661_v52 = vpop.permute.xlu1 %3660 }
 0x719   :  { %v3663_v59 = vunpack.i.h.bf16 %v3661_v52  ;;  %v3662_v61 = vunpack.i.l.bf16 %v3661_v52 }
 0x71b   :  { %v3492_v3 = vpack.c.bf16 %v3663_v59, %v3662_v61 }
 0x71c   :  { %v848_v5 = vpop.permute.xlu1 %847 }
 0x71f   :  { %v3780_v58 = vpop.eup %3779 }
 0x720   :  { %v554_v62 = vmul.f32 %v3780_v58, %v3774_v29  ;;  %v3782_v1 = vpop.eup %3781 }
 0x721   :  { %v759_v4 = vmul.f32 %v3782_v1, %v3770_v23 }
 0x722   :  { %3240 = vmatprep.mubr.msk.f32.mxu1 %vm329_vm5, %v554_v62 }
 0x723   :  { %3241 = vmatmul.mubr.msk.f32.vlgmr.msra.gmra.mrb[8].mxu1 %vm329_vm5, %v555_v0 }
 0x724   :  { %3491 = vmatpush3.bf16.msra.mxu1 %v3488_v51  ;;  %3254 = vmatprep.mubr.msk.f32.mxu1 %vm329_vm5, %v758_v2 }
 0x725   :  { %3494 = vmatprep.subr.msk.bf16.mxu1 %vm4021_vm4, %v3492_v3 }
 0x727   :  { %3255 = vmatmul.mubr.msk.f32.vlgmr.msra.gmra.mrb[10].mxu1 %vm329_vm5, %v759_v4 }
 0x728   :  { %3261 = vmatprep.mubr.msk.f32.mxu1 %vm233_vm3, %v848_v5 }
 0x72d   :  { %3497 = vmatpush3.bf16.xpose.msk.msra.mxu1 %vm4021_vm4, %v3492_v3 }
 0x734   :  { %3262 = vmatmul.mubr.msk.f32.vlgmr.msra.gmra.mrb[12].mxu1 %vm233_vm3, %v850_v6 }
 0x7f6   :  { %v3242_v7 = vpop.f32.mrb[8].mxu1 }
 0x7f7   :  { %v634_v8 = vpop.f32.mrb[9].mxu1 }
 0x7fa   :  { %v3256_v9 = vpop.f32.mrb[10].mxu1 }
 0x7fb   :  { %v838_v10 = vpop.f32.mrb[11].mxu1 }
 0x807   :  { %v3263_v11 = vpop.f32.mrb[12].mxu1 }
 0x808   :  { %v939_v12 = vmul.f32 0.35355338, %v3263_v11  ;;  %v929_v13 = vpop.f32.mrb[13].mxu1 }
 0x809   :  { %v938_v17 = vmul.f32 0.35355338, %v929_v13 }
 0x80a   :  { %v941_v18 = vadd.f32 %v939_v12, %v4031_v60 }
 0x80b   :  { %v940_v19 = vadd.f32 %v938_v17, %v4033_v63 }
 0x80c   :  { %v945_v20 = vsel %vm329_vm5, %v941_v18, -inf }
 0x80d   :  { %946 = vmax.xlane.f32.xlu0 %v945_v20  ;;  %v942_v21 = vsel %vm329_vm5, %v940_v19, -inf }
 0x80e   :  { %943 = vmax.xlane.f32.xlu1 %v942_v21 }
 0x89a   :  { %v947_v22 = vpop.xlane.xlu0 %946 }
 0x89b   :  { %v949_v23 = vsub.f32 %v941_v18, %v947_v22  ;;  %v944_v24 = vpop.xlane.xlu1 %943  ;;  %v133_v22 = vld [vmem:[%s4439_s2 + $0x8] sm:$0xff] }
 0x89c   :  { %v948_v25 = vsub.f32 %v940_v19, %v944_v24 }
 0x89d   :  { %v952_v26 = vmul.f32 1.442695, %v949_v23  ;;  %v135_v23 = vld [vmem:[%s4439_s2 + $0x18] sm:$0xff] }
 0x89e   :  { %v950_v27 = vmul.f32 1.442695, %v948_v25  ;;  %v3510_v24 = vpack.c.bf16 %v135_v23, %v133_v22  ;;  %v137_v25 = vld [vmem:[%s4439_s2 + $0x28] sm:$0xff] }
 0x89f   :  { %3783 = vpow2.f32 %v952_v26  ;;  %v139_v26 = vld [vmem:[%s4439_s2 + $0x38] sm:$0xff] }
 0x8a0   :  { %3785 = vpow2.f32 %v950_v27  ;;  %3511 = vmatprep.subr.bf16.mxu1 %v3510_v24  ;;  %v3514_v27 = vpack.c.bf16 %v139_v26, %v137_v25 }
 0x8a1   :  { %3513 = vmatpush3.bf16.msra.mxu1 %v3510_v24 }
 0x8a2   :  { %3515 = vmatprep.subr.bf16.mxu1 %v3514_v27 }
 0x8a5   :  { %3517 = vmatpush3.bf16.msra.mxu1 %v3514_v27 }
 0x8a9   :  { %v3784_v28 = vpop.eup %3783 }
 0x8aa   :  { %v3786_v29 = vpop.eup %3785  ;;  %v957_v30 = vsel %vm329_vm5, %v3784_v28, 0.0 }
 0x8ab   :  { %958 = vadd.xlane.f32.xlu1 %v957_v30  ;;  %v954_v31 = vsel %vm329_vm5, %v3786_v29, 0.0 }
 0x8ac   :  { %955 = vadd.xlane.f32.xlu0 %v954_v31 }
 0x8bc   :  { %3670 = vrot.lane.b32.xlu1 %v3669_v16, %s3851_s29 }
 0x8c0   :  { %3675 = vrot.lane.b32.xlu1 %v3674_v32, %s3851_s29 }
 0x8c2   :  { %3665 = vrot.lane.b32.xlu0 %v4014_v53, %s3852_s30 }
 0x8c4   :  { %1055 = vrot.lane.b32.xlu1 %v3242_v7, %s3853_s7 }
 0x8c6   :  { %1053 = vrot.lane.b32.xlu0 %v634_v8, %s3853_s7 }
 0x8c8   :  { %1063 = vrot.lane.b32.xlu1 %v3256_v9, %s3854_s8 }
 0x8ca   :  { %1061 = vrot.lane.b32.xlu0 %v838_v10, %s3854_s8 }
 0x938   :  { %v959_v14 = vpop.xlane.xlu1 %958 }
 0x939   :  { %3787 = vrcp.f32 %v959_v14  ;;  %v956_v15 = vpop.xlane.xlu0 %955 }
 0x93a   :  { %3789 = vrcp.f32 %v956_v15 }
 0x93c   :  { %v3671_v16 = vpop.permute.xlu1 %3670 }
 0x93d   :  { %v3673_v36 = vunpack.i.h.bf16 %v3671_v16  ;;  %v3672_v37 = vunpack.i.l.bf16 %v3671_v16  ;;  %v3666_v33 = vpop.permute.xlu0 %3665 }
 0x93e   :  { %v3668_v34 = vunpack.i.h.bf16 %v3666_v33  ;;  %v3667_v53 = vunpack.i.l.bf16 %v3666_v33 }
 0x93f   :  { %v3502_v35 = vpack.c.bf16 %v3673_v36, %v3672_v37 }
 0x940   :  { %v3498_v38 = vpack.c.bf16 %v3668_v34, %v3667_v53  ;;  %v3676_v50 = vpop.permute.xlu1 %3675 }
 0x941   :  { %v3678_v39 = vunpack.i.h.bf16 %v3676_v50  ;;  %v3677_v40 = vunpack.i.l.bf16 %v3676_v50  ;;  %v1054_v61 = vpop.permute.xlu0 %1053 }
 0x942   :  { %3499 = vmatprep.subr.bf16.mxu0 %v3498_v38  ;;  %v1075_v1 = vsel %vm233_vm3, %v4071_v49, %v1054_v61 }
 0x943   :  { %v3788_v41 = vpop.eup %3787  ;;  %3501 = vmatpush3.bf16.msra.mxu0 %v3498_v38  ;;  %v3506_v55 = vpack.c.bf16 %v3678_v39, %v3677_v40 }
 0x944   :  { %v3790_v51 = vpop.eup %3789  ;;  %3503 = vmatprep.subr.bf16.mxu0 %v3502_v35  ;;  %v963_v52 = vmul.f32 %v3788_v41, %v3784_v28  ;;  %v1056_v59 = vpop.permute.xlu1 %1055  ;;  %v3679_v28 = vpack.i.bf16 %v135_v23, %v133_v22 }
 0x945   :  { %v962_v54 = vmul.f32 %v3790_v51, %v3786_v29  ;;  %v1062_v0 = vpop.permute.xlu0 %1061  ;;  %v1076_v3 = vsel %vm233_vm3, %v4069_v42, %v1056_v59  ;;  %v3684_v29 = vpack.i.bf16 %v139_v26, %v137_v25  ;;  %v1448_v26 = vsub.s32 2, %v3990_v45 }
 0x946   :  { %v1077_v4 = vsel %vm329_vm5, %v1075_v1, %v1062_v0 }
 0x947   :  { %3268 = vmatprep.mubr.msk.f32.mxu0 %vm329_vm5, %v962_v54  ;;  %v1449_v27 = vrot.slane %v3998_v47, %v1448_v26 }
 0x948   :  { %3269 = vmatmul.mubr.msk.f32.vlgmr.msra.gmra.mrb[4].mxu0 %vm329_vm5, %v963_v52  ;;  %v1064_v62 = vpop.permute.xlu1 %1063 }
 0x949   :  { %3505 = vmatpush3.bf16.msra.mxu0 %v3502_v35  ;;  %v1078_v6 = vsel %vm329_vm5, %v1076_v3, %v1064_v62 }
 0x94a   :  { %3507 = vmatprep.subr.bf16.mxu0 %v3506_v55 }
 0x94d   :  { %3509 = vmatpush3.bf16.msra.mxu0 %v3506_v55 }
 0xa1b   :  { %v3270_v56 = vpop.f32.mrb[4].mxu0 }
 0xa1c   :  { %1071 = vrot.lane.b32.xlu1 %v3270_v56, %s3855_s9  ;;  %v1042_v58 = vpop.f32.mrb[5].mxu0 }
 0xa1d   :  { %1069 = vrot.lane.b32.xlu0 %v1042_v58, %s3855_s9 }
 0xa21   :  { %1099 = vrot.lane.b32.xlu0 %v4002_v48, %s3851_s29 }
 0xa8e   :  { %v1072_v2 = vpop.permute.xlu1 %1071 }
 0xa8f   :  { %v1070_v5 = vpop.permute.xlu0 %1069  ;;  %v1081_v48 = vsel %vm1079_vm6, %v1078_v6, %v1072_v2 }
 0xa90   :  { %v1080_v7 = vsel %vm1079_vm6, %v1077_v4, %v1070_v5 }
 0xa91   :  { %3279 = vmatprep.mubr.msk.f32.mxu0 %vm145_vm2, %v1080_v7 }
 0xa92   :  { %3280 = vmatmul.mubr.msk.f32.vlgmr.msra.gmra.mrb[6].mxu0 %vm145_vm2, %v1081_v48 }
 0xa93   :  { %v1100_v8 = vpop.permute.xlu0 %1099 }
 0xb65   :  { %v3281_v9 = vpop.f32.mrb[6].mxu0 }
 0xb66   :  { %v1180_v49 = vadd.f32 %v3281_v9, %v1100_v8  ;;  %v1174_v10 = vpop.f32.mrb[7].mxu0 }
 0xb67   :  { %v1175_v11 = vadd.f32 %v1174_v10, %v1100_v8 }
 0xb68   :  { %v4141_v42 = vadd.f32 %v1180_v49, %v3983_v44  ;;  %v1218_v44 = vsub.s32 1, %v3990_v45  ;;  %v2775_v45 = vld [vmem:[%s4442_s5 + $0x10] sm:$0xff] }
 0xb69   :  { %v1183_v12 = vadd.f32 %v1175_v11, %v3981_v43 }
 0xb6a   :  { %v1188_v13 = vsel %vm145_vm2, %v4141_v42, 0.0  ;;  %v1195_v19 = vmul.f32 %v4141_v42, %v4141_v42  ;;  %v4155_v43 = vrot.slane %v3998_v47, %v1218_v44  ;;  %v4208_v47 = vld [vmem:[%s4439_s2 + $0x60] sm:$0xff] }
 0xb6b   :  { %1189 = vadd.xlane.f32.xlu0 %v1188_v13  ;;  %v1185_v17 = vsel %vm145_vm2, %v1183_v12, 0.0  ;;  %v1194_v18 = vmul.f32 %v1183_v12, %v1183_v12 }
 0xb6c   :  { %1186 = vadd.xlane.f32.xlu1 %v1185_v17  ;;  %v1199_v21 = vsel %vm145_vm2, %v1195_v19, 0.0 }
 0xb6d   :  { %v1196_v20 = vsel %vm145_vm2, %v1194_v18, 0.0 }
 0xb6f   :  { %1197 = vadd.xlane.f32.xlu0 %v1196_v20 }
 0xb70   :  { %1200 = vadd.xlane.f32.xlu1 %v1199_v21 }
 0xb81   :  { %1226 = vrot.lane.b32.xlu1 %v4155_v43, %s3851_s29 }
 0xb85   :  { %1221 = vrot.lane.b32.xlu0 %v4155_v43, %s3844_s22  ;;  %3680 = vrot.lane.b32.xlu1 %v3679_v28, %s3841_s18  ;;  %v4196_v28 = vld [vmem:[%s4439_s2 + $0x40] sm:$0xff] }
 0xb89   :  { %3685 = vrot.lane.b32.xlu0 %v3684_v29, %s3841_s18  ;;  %1330 = vrot.lane.b32.xlu1 %v4155_v43, %s3841_s18  ;;  %v4201_v29 = vld [vmem:[%s4439_s2 + $0x50] sm:$0xff] }
 0xbf8   :  { %v1190_v30 = vpop.xlane.xlu0 %1189 }
 0xbf9   :  { %v1187_v31 = vpop.xlane.xlu1 %1186  ;;  %v1193_v32 = vmul.f32 0.03125, %v1190_v30  ;;  %v3526_v30 = vpack.c.bf16 %v4201_v29, %v4196_v28 }
 0xbfa   :  { %v1192_v14 = vmul.f32 0.03125, %v1187_v31  ;;  %v4213_v31 = vld [vmem:[%s4439_s2 + $0x70] sm:$0xff] }
 0xbfb   :  { %v1205_v33 = vmul.f32 %v1193_v32, %v1193_v32  ;;  %v1209_v0 = vsub.f32 %v4141_v42, %v1193_v32  ;;  %3527 = vmatprep.subr.bf16.mxu1 %v3526_v30  ;;  %v3530_v32 = vpack.c.bf16 %v4213_v31, %v4208_v47 }
 0xbfc   :  { %v1204_v15 = vmul.f32 %v1192_v14, %v1192_v14  ;;  %v1198_v16 = vpop.xlane.xlu0 %1197  ;;  %v1208_v58 = vsub.f32 %v1183_v12, %v1192_v14 }
 0xbfd   :  { %v1202_v36 = vmul.f32 0.03125, %v1198_v16  ;;  %v1201_v37 = vpop.xlane.xlu1 %1200 }
 0xbfe   :  { %v1203_v34 = vmul.f32 0.03125, %v1201_v37 }
 0xbff   :  { %v1206_v53 = vsub.f32 %v1202_v36, %v1204_v15 }
 0xc00   :  { %v1207_v35 = vsub.f32 %v1203_v34, %v1205_v33  ;;  %v1222_v39 = vpop.permute.xlu0 %1221 }
 0xc01   :  { %v1210_v38 = vadd.f32 1e-05, %v1206_v53  ;;  %v1227_v40 = vpop.permute.xlu1 %1226 }
 0xc02   :  { %v1211_v50 = vadd.f32 1e-05, %v1207_v35 }
 0xc03   :  { %3791 = vrsqrt.f32 %v1210_v38 }
 0xc04   :  { %3793 = vrsqrt.f32 %v1211_v50  ;;  %v3686_v51 = vpop.permute.xlu0 %3685 }
 0xc05   :  { %v3681_v41 = vpop.permute.xlu1 %3680  ;;  %v3688_v55 = vunpack.i.h.bf16 %v3686_v51  ;;  %v3687_v56 = vunpack.i.l.bf16 %v3686_v51 }
 0xc06   :  { %v3683_v54 = vunpack.i.h.bf16 %v3681_v41  ;;  %v3682_v52 = vunpack.i.l.bf16 %v3681_v41 }
 0xc07   :  { %v3522_v61 = vpack.c.bf16 %v3688_v55, %v3687_v56 }
 0xc08   :  { %v3518_v59 = vpack.c.bf16 %v3683_v54, %v3682_v52 }
 0xc09   :  { %v1331_v42 = vpop.permute.xlu1 %1330 }
 0xc0a   :  { %3519 = vmatprep.subr.bf16.mxu0 %v3518_v59 }
 0xc0b   :  { %3521 = vmatpush3.bf16.msra.mxu0 %v3518_v59 }
 0xc0c   :  { %3523 = vmatprep.subr.bf16.mxu0 %v3522_v61 }
 0xc0d   :  { %v3792_v62 = vpop.eup %3791 }
 0xc0e   :  { %v3794_v1 = vpop.eup %3793  ;;  %v1214_v2 = vmul.f32 %v3792_v62, %v1208_v58 }
 0xc0f   :  { %v1215_v3 = vmul.f32 %v3794_v1, %v1209_v0  ;;  %3525 = vmatpush3.bf16.msra.mxu0 %v3522_v61 }
 0xc10   :  { %v1224_v4 = vmul.f32 %v1222_v39, %v1214_v2  ;;  %v4228_v2 = vld [vmem:[%s4441_s3 + $0x4] sm:$0x7] }
 0xc11   :  { %v1225_v5 = vmul.f32 %v1222_v39, %v1215_v3  ;;  %v4232_v3 = vrot.slane %v4228_v2, %v3993_v46 }
 0xc12   :  { %v1229_v6 = vadd.f32 %v1227_v40, %v1224_v4 }
 0xc13   :  { %v1230_v7 = vadd.f32 %v1227_v40, %v1225_v5 }
 0xc14   :  { %3290 = vmatprep.mubr.msk.f32.mxu1 %vm145_vm2, %v1229_v6 }
 0xc15   :  { %3291 = vmatmul.mubr.msk.f32.vlgmr.msra.gmra.mrb[14].mxu1 %vm145_vm2, %v1230_v7 }
 0xc16   :  { %3529 = vmatpush3.bf16.msra.mxu1 %v3526_v30 }
 0xc17   :  { %3531 = vmatprep.subr.bf16.mxu1 %v3530_v32 }
 0xc1a   :  { %3533 = vmatpush3.bf16.msra.mxu1 %v3530_v32 }
 0xce8   :  { %v3292_v48 = vpop.f32.mrb[14].mxu1 }
 0xce9   :  { %v1309_v8 = vadd.f32 %v3292_v48, %v4155_v43  ;;  %v1303_v9 = vpop.f32.mrb[15].mxu1 }
 0xcea   :  { %v1304_v49 = vadd.f32 %v1303_v9, %v4155_v43 }
 0xceb   :  { %v1313_v11 = vmax.f32 %v1309_v8, 0.0 }
 0xcec   :  { %v1312_v10 = vmax.f32 %v1304_v49, 0.0 }
 0xcee   :  { %3301 = vmatprep.mubr.msk.f32.mxu0 %vm145_vm2, %v1312_v10 }
 0xcef   :  { %3302 = vmatmul.mubr.msk.f32.vlgmr.msra.gmra.mrb[8].mxu0 %vm145_vm2, %v1313_v11 }
 0xdc2   :  { %v3303_v12 = vpop.f32.mrb[8].mxu0 }
 0xdc3   :  { %v1411_v13 = vadd.f32 %v3303_v12, %v1331_v42  ;;  %v1405_v17 = vpop.f32.mrb[9].mxu0 }
 0xdc4   :  { %v1406_v18 = vadd.f32 %v1405_v17, %v1331_v42 }
 0xdc5   :  { %v1415_v19 = vadd.f32 %v1411_v13, %v1230_v7 }
 0xdc6   :  { %v1414_v20 = vadd.f32 %v1406_v18, %v1229_v6 }
 0xdc7   :  { %v1419_v21 = vsel %vm145_vm2, %v1415_v19, 0.0  ;;  %v1425_v24 = vmul.f32 %v1415_v19, %v1415_v19 }
 0xdc8   :  { %1420 = vadd.xlane.f32.xlu1 %v1419_v21  ;;  %v1416_v22 = vsel %vm145_vm2, %v1414_v20, 0.0  ;;  %v1424_v23 = vmul.f32 %v1414_v20, %v1414_v20 }
 0xdc9   :  { %1417 = vadd.xlane.f32.xlu0 %v1416_v22  ;;  %v1429_v25 = vsel %vm145_vm2, %v1425_v24, 0.0 }
 0xdca   :  { %v1426_v43 = vsel %vm145_vm2, %v1424_v23, 0.0 }
 0xdcd   :  { %1427 = vadd.xlane.f32.xlu0 %v1426_v43 }
 0xdd1   :  { %1430 = vadd.xlane.f32.xlu0 %v1429_v25 }
 0xdd9   :  { %1453 = vrot.lane.b32.xlu1 %v1449_v27, %s3841_s18 }
 0xe55   :  { %v1421_v16 = vpop.xlane.xlu1 %1420 }
 0xe56   :  { %v1418_v14 = vpop.xlane.xlu0 %1417  ;;  %v1423_v37 = vmul.f32 0.03125, %v1421_v16 }
 0xe57   :  { %v1422_v15 = vmul.f32 0.03125, %v1418_v14 }
 0xe58   :  { %v1435_v38 = vmul.f32 %v1423_v37, %v1423_v37  ;;  %v1439_v56 = vsub.f32 %v1415_v19, %v1423_v37 }
 0xe59   :  { %v1434_v33 = vmul.f32 %v1422_v15, %v1422_v15  ;;  %v1438_v51 = vsub.f32 %v1414_v20, %v1422_v15  ;;  %v1454_v55 = vpop.permute.xlu1 %1453 }
 0xe5a   :  { %v1428_v36 = vpop.xlane.xlu0 %1427 }
 0xe5b   :  { %v1432_v34 = vmul.f32 0.03125, %v1428_v36 }
 0xe5d   :  { %v1436_v53 = vsub.f32 %v1432_v34, %v1434_v33 }
 0xe5e   :  { %v1431_v35 = vpop.xlane.xlu0 %1430 }
 0xe5f   :  { %v1440_v50 = vadd.f32 1e-05, %v1436_v53  ;;  %v1433_v39 = vmul.f32 0.03125, %v1431_v35 }
 0xe61   :  { %3795 = vrsqrt.f32 %v1440_v50  ;;  %v1437_v40 = vsub.f32 %v1433_v39, %v1435_v38 }
 0xe63   :  { %v1441_v41 = vadd.f32 1e-05, %v1437_v40 }
 0xe65   :  { %3797 = vrsqrt.f32 %v1441_v41 }
 0xe6b   :  { %v3796_v54 = vpop.eup %3795 }
 0xe6c   :  { %v1444_v52 = vmul.f32 %v3796_v54, %v1438_v51 }
 0xe6e   :  { %v1450_v58 = vmul.f32 %v1449_v27, %v1444_v52 }
 0xe6f   :  { %v3798_v59 = vpop.eup %3797 }
 0xe70   :  { %v1445_v61 = vmul.f32 %v3798_v59, %v1439_v56  ;;  %v4217_v62 = vadd.f32 %v1454_v55, %v1450_v58 }
 0xe72   :  { %v1451_v0 = vmul.f32 %v1449_v27, %v1445_v61  ;;  %3312 = vmatprep.mubr.msk.f32.mxu1 %vm145_vm2, %v4217_v62 }
 0xe74   :  { %v4221_v1 = vadd.f32 %v1454_v55, %v1451_v0 }
 0xe76   :  { %3313 = vmatmul.mubr.msk.f32.vlgmr.msra.gmra.mrb[16].mxu1 %vm145_vm2, %v4221_v1 }
 0xf49   :  { %v3314_v4 = vpop.f32.mrb[16].mxu1 }
 0xf4a   :  { %v4235_v5 = vadd.f32 %v3314_v4, %v4232_v3  ;;  %v1545_v6 = vpop.f32.mrb[17].mxu1 }
 0xf4b   :  { %v4238_v7 = vadd.f32 %v1545_v6, %v4232_v3 }
 0xf4d   :  { %3319 = vmatprep.mubr.msk.f32.mxu0 %vm233_vm3, %v4238_v7  ;;  %v4244_v48 = vpack.i.bf16 %v4235_v5, %v4238_v7 }
 0xf4f   :  { %3690 = vrot.lane.b32.xlu0 %v4244_v48, %s3841_s18 }
 0xfc1   :  { %v3691_v8 = vpop.permute.xlu0 %3690 }
 0xfc2   :  { %v3693_v9 = vunpack.i.h.bf16 %v3691_v8  ;;  %v3692_v49 = vunpack.i.l.bf16 %v3691_v8 }
 0xfc4   :  { %v3534_v10 = vpack.c.bf16 %v3693_v9, %v3692_v49 }
 0xfc6   :  { %3536 = vmatprep.subr.msk.bf16.mxu0 %vm4021_vm4, %v3534_v10 }
 0xfc7   :  { %3539 = vmatpush3.bf16.xpose.msk.msra.mxu0 %vm4021_vm4, %v3534_v10 }
 0xfce   :  { %3320 = vmatmul.mubr.msk.f32.vlgmr.msra.gmra.mrb[10].mxu0 %vm233_vm3, %v4235_v5 }
0x10a1   :  { %v3321_v11 = vpop.f32.mrb[10].mxu0 }
0x10a2   :  { %v1644_v42 = vmul.f32 0.35355338, %v3321_v11  ;;  %v1634_v12 = vpop.f32.mrb[11].mxu0 }
0x10a3   :  { %v1643_v13 = vmul.f32 0.35355338, %v1634_v12 }
0x10a4   :  { %v1646_v17 = vadd.f32 %v1644_v42, %v4031_v60 }
0x10a5   :  { %v1645_v18 = vadd.f32 %v1643_v13, %v4033_v63 }
0x10a6   :  { %v1650_v19 = vsel %vm329_vm5, %v1646_v17, -inf }
0x10a7   :  { %1651 = vmax.xlane.f32.xlu0 %v1650_v19  ;;  %v1647_v20 = vsel %vm329_vm5, %v1645_v18, -inf }
0x10a8   :  { %1648 = vmax.xlane.f32.xlu1 %v1647_v20 }
0x10b9   :  { %3695 = vrot.lane.b32.xlu1 %v4244_v48, %s3844_s22 }
0x10bd   :  { %1756 = vrot.lane.b32.xlu1 %v4238_v7, %s3843_s21 }
0x1134   :  { %v1652_v21 = vpop.xlane.xlu0 %1651 }
0x1135   :  { %v1654_v22 = vsub.f32 %v1646_v17, %v1652_v21  ;;  %v1649_v23 = vpop.xlane.xlu1 %1648 }
0x1136   :  { %v1653_v43 = vsub.f32 %v1645_v18, %v1649_v23 }
0x1137   :  { %v1657_v24 = vmul.f32 1.442695, %v1654_v22 }
0x1138   :  { %v1655_v25 = vmul.f32 1.442695, %v1653_v43 }
0x1139   :  { %3799 = vpow2.f32 %v1657_v24  ;;  %v3696_v27 = vpop.permute.xlu1 %3695 }
0x113a   :  { %3801 = vpow2.f32 %v1655_v25  ;;  %v3698_v30 = vunpack.i.h.bf16 %v3696_v27  ;;  %v3697_v32 = vunpack.i.l.bf16 %v3696_v27 }
0x113c   :  { %v3540_v14 = vpack.c.bf16 %v3698_v30, %v3697_v32 }
0x113d   :  { %v1757_v33 = vpop.permute.xlu1 %1756 }
0x113e   :  { %3541 = vmatprep.subr.bf16.mxu1 %v3540_v14 }
0x113f   :  { %3543 = vmatpush3.bf16.msra.mxu1 %v3540_v14 }
0x1143   :  { %v3800_v15 = vpop.eup %3799 }
0x1144   :  { %v3802_v16 = vpop.eup %3801  ;;  %v1662_v36 = vsel %vm329_vm5, %v3800_v15, 0.0 }
0x1145   :  { %1663 = vadd.xlane.f32.xlu0 %v1662_v36  ;;  %v1659_v37 = vsel %vm329_vm5, %v3802_v16, 0.0 }
0x1146   :  { %1660 = vadd.xlane.f32.xlu1 %v1659_v37 }
0x1157   :  { %1758 = vrot.lane.b32.xlu1 %v4235_v5, %s3843_s21 }
0x115b   :  { %3700 = vrot.lane.b32.xlu0 %v4244_v48, %s3842_s20 }
0x11d2   :  { %v1664_v34 = vpop.xlane.xlu0 %1663 }
0x11d3   :  { %3803 = vrcp.f32 %v1664_v34  ;;  %v1661_v53 = vpop.xlane.xlu1 %1660 }
0x11d4   :  { %3805 = vrcp.f32 %v1661_v53 }
0x11d6   :  { %v3701_v35 = vpop.permute.xlu0 %3700 }
0x11d7   :  { %v3703_v38 = vunpack.i.h.bf16 %v3701_v35  ;;  %v3702_v50 = vunpack.i.l.bf16 %v3701_v35  ;;  %v1759_v52 = vpop.permute.xlu1 %1758 }
0x11d9   :  { %v3544_v39 = vpack.c.bf16 %v3703_v38, %v3702_v50 }
0x11db   :  { %3546 = vmatprep.subr.msk.bf16.mxu1 %vm4021_vm4, %v3544_v39 }
0x11dd   :  { %v3804_v40 = vpop.eup %3803 }
0x11de   :  { %v3806_v41 = vpop.eup %3805  ;;  %v1668_v54 = vmul.f32 %v3804_v40, %v3800_v15 }
0x11df   :  { %v1667_v51 = vmul.f32 %v3806_v41, %v3802_v16 }
0x11e1   :  { %3326 = vmatprep.mubr.msk.f32.mxu1 %vm329_vm5, %v1667_v51 }
0x11e2   :  { %3327 = vmatmul.mubr.msk.f32.vlgmr.msra.gmra.mrb[18].mxu1 %vm329_vm5, %v1668_v54 }
0x11e3   :  { %3549 = vmatpush3.bf16.xpose.msk.msra.mxu1 %vm4021_vm4, %v3544_v39  ;;  %3333 = vmatprep.mubr.msk.f32.mxu1 %vm233_vm3, %v1757_v33 }
0x11ea   :  { %3334 = vmatmul.mubr.msk.f32.vlgmr.msra.gmra.mrb[20].mxu1 %vm233_vm3, %v1759_v52 }
0x12b5   :  { %v4276_v55 = vpop.f32.mrb[18].mxu1 }
0x12b6   :  { %v4278_v56 = vpop.f32.mrb[19].mxu1 }
0x12bd   :  { %v3335_v58 = vpop.f32.mrb[20].mxu1 }
0x12be   :  { %v1848_v59 = vmul.f32 0.35355338, %v3335_v58  ;;  %v1838_v61 = vpop.f32.mrb[21].mxu1 }
0x12bf   :  { %v1847_v0 = vmul.f32 0.35355338, %v1838_v61 }
0x12c0   :  { %v1850_v4 = vadd.f32 %v1848_v59, %v4031_v60 }
0x12c1   :  { %v1849_v6 = vadd.f32 %v1847_v0, %v4033_v63 }
0x12c2   :  { %v1854_v8 = vsel %vm329_vm5, %v1850_v4, -inf }
0x12c3   :  { %1855 = vmax.xlane.f32.xlu1 %v1854_v8  ;;  %v1851_v9 = vsel %vm329_vm5, %v1849_v6, -inf }
0x12c4   :  { %1852 = vmax.xlane.f32.xlu0 %v1851_v9 }
0x12d4   :  { %3705 = vrot.lane.b32.xlu1 %v4244_v48, %s3847_s25 }
0x12d8   :  { %1960 = vrot.lane.b32.xlu1 %v4238_v7, %s3846_s24 }
0x12dc   :  { %1962 = vrot.lane.b32.xlu1 %v4235_v5, %s3846_s24 }
0x1350   :  { %v1856_v49 = vpop.xlane.xlu1 %1855 }
0x1351   :  { %v1858_v10 = vsub.f32 %v1850_v4, %v1856_v49  ;;  %v1853_v11 = vpop.xlane.xlu0 %1852 }
0x1352   :  { %v1857_v42 = vsub.f32 %v1849_v6, %v1853_v11 }
0x1353   :  { %v1861_v12 = vmul.f32 1.442695, %v1858_v10 }
0x1354   :  { %v1859_v13 = vmul.f32 1.442695, %v1857_v42  ;;  %v3706_v17 = vpop.permute.xlu1 %3705 }
0x1355   :  { %3807 = vpow2.f32 %v1861_v12  ;;  %v3708_v18 = vunpack.i.h.bf16 %v3706_v17  ;;  %v3707_v19 = vunpack.i.l.bf16 %v3706_v17 }
0x1356   :  { %3809 = vpow2.f32 %v1859_v13 }
0x1357   :  { %v3550_v20 = vpack.c.bf16 %v3708_v18, %v3707_v19 }
0x1358   :  { %v1961_v33 = vpop.permute.xlu1 %1960 }
0x1359   :  { %3551 = vmatprep.subr.bf16.mxu0 %v3550_v20 }
0x135a   :  { %3553 = vmatpush3.bf16.msra.mxu0 %v3550_v20 }
0x135c   :  { %v1963_v34 = vpop.permute.xlu1 %1962 }
0x135f   :  { %v3808_v21 = vpop.eup %3807 }
0x1360   :  { %v1866_v22 = vsel %vm329_vm5, %v3808_v21, 0.0  ;;  %v3810_v23 = vpop.eup %3809 }
0x1361   :  { %1867 = vadd.xlane.f32.xlu0 %v1866_v22  ;;  %v1863_v43 = vsel %vm329_vm5, %v3810_v23, 0.0 }
0x1365   :  { %1864 = vadd.xlane.f32.xlu0 %v1863_v43 }
0x137b   :  { %3710 = vrot.lane.b32.xlu0 %v4244_v48, %s3845_s23 }
0x13ee   :  { %v1868_v24 = vpop.xlane.xlu0 %1867 }
0x13ef   :  { %3811 = vrcp.f32 %v1868_v24 }
0x13f2   :  { %v1865_v25 = vpop.xlane.xlu0 %1864 }
0x13f3   :  { %3813 = vrcp.f32 %v1865_v25 }
0x13f6   :  { %v3711_v27 = vpop.permute.xlu0 %3710 }
0x13f7   :  { %v3713_v30 = vunpack.i.h.bf16 %v3711_v27  ;;  %v3712_v32 = vunpack.i.l.bf16 %v3711_v27 }
0x13f9   :  { %v3554_v14 = vpack.c.bf16 %v3713_v30, %v3712_v32  ;;  %v3812_v15 = vpop.eup %3811 }
0x13fa   :  { %v1872_v37 = vmul.f32 %v3812_v15, %v3808_v21 }
0x13fb   :  { %3556 = vmatprep.subr.msk.bf16.mxu0 %vm4021_vm4, %v3554_v14 }
0x13fd   :  { %v3814_v16 = vpop.eup %3813 }
0x13fe   :  { %v1871_v36 = vmul.f32 %v3814_v16, %v3810_v23 }
0x1400   :  { %3340 = vmatprep.mubr.msk.f32.mxu0 %vm329_vm5, %v1871_v36 }
0x1401   :  { %3341 = vmatmul.mubr.msk.f32.vlgmr.msra.gmra.mrb[12].mxu0 %vm329_vm5, %v1872_v37 }
0x1402   :  { %3559 = vmatpush3.bf16.xpose.msk.msra.mxu0 %vm4021_vm4, %v3554_v14  ;;  %3347 = vmatprep.mubr.msk.f32.mxu0 %vm233_vm3, %v1961_v33 }
0x1409   :  { %3348 = vmatmul.mubr.msk.f32.vlgmr.msra.gmra.mrb[14].mxu0 %vm233_vm3, %v1963_v34  ;;  %v3734_v34 = vpack.i.bf16 %v4213_v31, %v4208_v47 }
0x14d4   :  { %v4302_v53 = vpop.f32.mrb[12].mxu0 }
0x14d5   :  { %v4304_v35 = vpop.f32.mrb[13].mxu0 }
0x14dc   :  { %v3349_v38 = vpop.f32.mrb[14].mxu0 }
0x14dd   :  { %v2052_v50 = vmul.f32 0.35355338, %v3349_v38  ;;  %v2042_v39 = vpop.f32.mrb[15].mxu0 }
0x14de   :  { %v2051_v40 = vmul.f32 0.35355338, %v2042_v39 }
0x14df   :  { %v2054_v41 = vadd.f32 %v2052_v50, %v4031_v60 }
0x14e0   :  { %v2053_v51 = vadd.f32 %v2051_v40, %v4033_v63 }
0x14e1   :  { %v2058_v54 = vsel %vm329_vm5, %v2054_v41, -inf }
0x14e2   :  { %2059 = vmax.xlane.f32.xlu1 %v2058_v54  ;;  %v2055_v52 = vsel %vm329_vm5, %v2053_v51, -inf }
0x14e3   :  { %2056 = vmax.xlane.f32.xlu0 %v2055_v52 }
0x14f3   :  { %3715 = vrot.lane.b32.xlu1 %v4244_v48, %s3848_s26 }
0x14f7   :  { %2164 = vrot.lane.b32.xlu1 %v4238_v7, %s3849_s27 }
0x14fb   :  { %2166 = vrot.lane.b32.xlu1 %v4235_v5, %s3849_s27 }
0x156f   :  { %v2060_v58 = vpop.xlane.xlu1 %2059 }
0x1570   :  { %v2062_v59 = vsub.f32 %v2054_v41, %v2060_v58  ;;  %v2057_v61 = vpop.xlane.xlu0 %2056  ;;  %v3729_v58 = vpack.i.bf16 %v4201_v29, %v4196_v28 }
0x1571   :  { %v2061_v0 = vsub.f32 %v2053_v51, %v2057_v61 }
0x1572   :  { %v2065_v4 = vmul.f32 1.442695, %v2062_v59 }
0x1573   :  { %v2063_v6 = vmul.f32 1.442695, %v2061_v0  ;;  %v3716_v8 = vpop.permute.xlu1 %3715 }
0x1574   :  { %3815 = vpow2.f32 %v2065_v4  ;;  %v3718_v9 = vunpack.i.h.bf16 %v3716_v8  ;;  %v3717_v49 = vunpack.i.l.bf16 %v3716_v8 }
0x1575   :  { %3817 = vpow2.f32 %v2063_v6 }
0x1576   :  { %v3560_v10 = vpack.c.bf16 %v3718_v9, %v3717_v49 }
0x1577   :  { %v2165_v24 = vpop.permute.xlu1 %2164 }
0x1578   :  { %3561 = vmatprep.subr.bf16.mxu1 %v3560_v10 }
0x1579   :  { %3563 = vmatpush3.bf16.msra.mxu1 %v3560_v10 }
0x157b   :  { %v2167_v25 = vpop.permute.xlu1 %2166 }
0x157e   :  { %v3816_v11 = vpop.eup %3815 }
0x157f   :  { %v2070_v7 = vsel %vm329_vm5, %v3816_v11, 0.0  ;;  %v3818_v42 = vpop.eup %3817 }
0x1580   :  { %2071 = vadd.xlane.f32.xlu0 %v2070_v7  ;;  %v2067_v5 = vsel %vm329_vm5, %v3818_v42, 0.0 }
0x1584   :  { %2068 = vadd.xlane.f32.xlu0 %v2067_v5 }
0x159a   :  { %3720 = vrot.lane.b32.xlu0 %v4244_v48, %s3850_s28 }
0x160d   :  { %v2072_v12 = vpop.xlane.xlu0 %2071 }
0x160e   :  { %3819 = vrcp.f32 %v2072_v12 }
0x1611   :  { %v2069_v13 = vpop.xlane.xlu0 %2068 }
0x1612   :  { %3821 = vrcp.f32 %v2069_v13 }
0x1615   :  { %v3721_v17 = vpop.permute.xlu0 %3720 }
0x1616   :  { %v3723_v18 = vunpack.i.h.bf16 %v3721_v17  ;;  %v3722_v19 = vunpack.i.l.bf16 %v3721_v17 }
0x1618   :  { %v3564_v20 = vpack.c.bf16 %v3723_v18, %v3722_v19  ;;  %v3820_v21 = vpop.eup %3819 }
0x1619   :  { %v2076_v43 = vmul.f32 %v3820_v21, %v3816_v11 }
0x161a   :  { %3566 = vmatprep.subr.msk.bf16.mxu1 %vm4021_vm4, %v3564_v20 }
0x161c   :  { %v3822_v22 = vpop.eup %3821 }
0x161d   :  { %v2075_v23 = vmul.f32 %v3822_v22, %v3818_v42 }
0x161f   :  { %3354 = vmatprep.mubr.msk.f32.mxu1 %vm329_vm5, %v2075_v23 }
0x1620   :  { %3355 = vmatmul.mubr.msk.f32.vlgmr.msra.gmra.mrb[22].mxu1 %vm329_vm5, %v2076_v43 }
0x1621   :  { %3569 = vmatpush3.bf16.xpose.msk.msra.mxu1 %vm4021_vm4, %v3564_v20  ;;  %3361 = vmatprep.mubr.msk.f32.mxu1 %vm233_vm3, %v2165_v24 }
0x1628   :  { %3362 = vmatmul.mubr.msk.f32.vlgmr.msra.gmra.mrb[24].mxu1 %vm233_vm3, %v2167_v25 }
0x16f3   :  { %v3356_v27 = vpop.f32.mrb[22].mxu1 }
0x16f4   :  { %v2155_v30 = vpop.f32.mrb[23].mxu1 }
0x16fb   :  { %v3363_v32 = vpop.f32.mrb[24].mxu1 }
0x16fc   :  { %v2256_v14 = vmul.f32 0.35355338, %v3363_v32  ;;  %v2246_v15 = vpop.f32.mrb[25].mxu1 }
0x16fd   :  { %v2255_v16 = vmul.f32 0.35355338, %v2246_v15 }
0x16fe   :  { %v2258_v36 = vadd.f32 %v2256_v14, %v4031_v60 }
0x16ff   :  { %v2257_v37 = vadd.f32 %v2255_v16, %v4033_v63 }
0x1700   :  { %v2262_v33 = vsel %vm329_vm5, %v2258_v36, -inf }
0x1701   :  { %2263 = vmax.xlane.f32.xlu1 %v2262_v33  ;;  %v2259_v57 = vsel %vm329_vm5, %v2257_v37, -inf }
0x1702   :  { %2260 = vmax.xlane.f32.xlu0 %v2259_v57 }
0x1712   :  { %3725 = vrot.lane.b32.xlu1 %v4244_v48, %s3852_s30 }
0x1716   :  { %3735 = vrot.lane.b32.xlu1 %v3734_v34, %s3851_s29  ;;  %v2991_v34 = vld [vmem:[%s4439_s2 + $0x58] sm:$0xff] }
0x171a   :  { %2370 = vrot.lane.b32.xlu1 %v4304_v35, %s3853_s7 }
0x171e   :  { %2378 = vrot.lane.b32.xlu1 %v2155_v30, %s3854_s8 }
0x178e   :  { %v2264_v60 = vpop.xlane.xlu1 %2263 }
0x178f   :  { %v2266_v63 = vsub.f32 %v2258_v36, %v2264_v60  ;;  %v2261_v38 = vpop.xlane.xlu0 %2260 }
0x1790   :  { %v2265_v50 = vsub.f32 %v2257_v37, %v2261_v38 }
0x1791   :  { %v2269_v39 = vmul.f32 1.442695, %v2266_v63  ;;  %v2995_v63 = vld [vmem:[%s4439_s2 + $0x78] sm:$0xff] }
0x1792   :  { %v2267_v40 = vmul.f32 1.442695, %v2265_v50  ;;  %v3726_v41 = vpop.permute.xlu1 %3725 }
0x1793   :  { %v3728_v51 = vunpack.i.h.bf16 %v3726_v41  ;;  %v3727_v54 = vunpack.i.l.bf16 %v3726_v41 }
0x1794   :  { %3823 = vpow2.f32 %v2267_v40 }
0x1795   :  { %v3570_v48 = vpack.c.bf16 %v3728_v51, %v3727_v54  ;;  %3825 = vpow2.f32 %v2269_v39 }
0x1796   :  { %v3736_v9 = vpop.permute.xlu1 %3735 }
0x1797   :  { %3571 = vmatprep.subr.bf16.mxu0 %v3570_v48  ;;  %v3738_v10 = vunpack.i.h.bf16 %v3736_v9  ;;  %v3737_v11 = vunpack.i.l.bf16 %v3736_v9 }
0x1798   :  { %3573 = vmatpush3.bf16.msra.mxu0 %v3570_v48 }
0x179a   :  { %v2371_v13 = vpop.permute.xlu1 %2370 }
0x179b   :  { %v2392_v19 = vsel %vm233_vm3, %v4278_v56, %v2371_v13 }
0x179e   :  { %v3824_v47 = vpop.eup %3823  ;;  %v2379_v18 = vpop.permute.xlu1 %2378 }
0x179f   :  { %v2271_v31 = vsel %vm329_vm5, %v3824_v47, 0.0  ;;  %v3826_v35 = vpop.eup %3825  ;;  %v2394_v21 = vsel %vm329_vm5, %v2392_v19, %v2379_v18 }
0x17a0   :  { %2272 = vadd.xlane.f32.xlu0 %v2271_v31  ;;  %v2274_v52 = vsel %vm329_vm5, %v3826_v35, 0.0 }
0x17a4   :  { %2275 = vadd.xlane.f32.xlu0 %v2274_v52 }
0x17ba   :  { %3730 = vrot.lane.b32.xlu0 %v3729_v58, %s3851_s29 }
0x17be   :  { %2372 = vrot.lane.b32.xlu0 %v4302_v53, %s3853_s7  ;;  %v3578_v53 = vpack.c.bf16 %v3738_v10, %v3737_v11 }
0x17c2   :  { %2380 = vrot.lane.b32.xlu0 %v3356_v27, %s3854_s8 }
0x182d   :  { %v2273_v59 = vpop.xlane.xlu0 %2272 }
0x182e   :  { %3827 = vrcp.f32 %v2273_v59 }
0x1831   :  { %v2276_v61 = vpop.xlane.xlu0 %2275 }
0x1832   :  { %3829 = vrcp.f32 %v2276_v61 }
0x1835   :  { %v3731_v0 = vpop.permute.xlu0 %3730 }
0x1836   :  { %v3733_v4 = vunpack.i.h.bf16 %v3731_v0  ;;  %v3732_v6 = vunpack.i.l.bf16 %v3731_v0 }
0x1838   :  { %v3828_v8 = vpop.eup %3827  ;;  %v3574_v49 = vpack.c.bf16 %v3733_v4, %v3732_v6 }
0x1839   :  { %v2279_v28 = vmul.f32 %v3828_v8, %v3824_v47  ;;  %v2373_v12 = vpop.permute.xlu0 %2372 }
0x183a   :  { %3575 = vmatprep.subr.bf16.mxu0 %v3574_v49  ;;  %v2393_v22 = vsel %vm233_vm3, %v4276_v55, %v2373_v12 }
0x183b   :  { %3368 = vmatprep.mubr.msk.f32.mxu0 %vm329_vm5, %v2279_v28 }
0x183c   :  { %v3830_v29 = vpop.eup %3829 }
0x183d   :  { %v2280_v7 = vmul.f32 %v3830_v29, %v3826_v35  ;;  %v2381_v17 = vpop.permute.xlu0 %2380 }
0x183e   :  { %v2395_v43 = vsel %vm329_vm5, %v2393_v22, %v2381_v17 }
0x183f   :  { %3369 = vmatmul.mubr.msk.f32.vlgmr.msra.gmra.mrb[16].mxu0 %vm329_vm5, %v2280_v7 }
0x1840   :  { %3577 = vmatpush3.bf16.msra.mxu0 %v3574_v49 }
0x1841   :  { %3579 = vmatprep.subr.bf16.mxu0 %v3578_v53 }
0x1844   :  { %3581 = vmatpush3.bf16.msra.mxu0 %v3578_v53 }
0x1912   :  { %v3370_v42 = vpop.f32.mrb[16].mxu0 }
0x1913   :  { %2388 = vrot.lane.b32.xlu0 %v3370_v42, %s3855_s9  ;;  %v2359_v5 = vpop.f32.mrb[17].mxu0 }
0x1914   :  { %2386 = vrot.lane.b32.xlu1 %v2359_v5, %s3855_s9 }
0x1918   :  { %2415 = vrot.lane.b32.xlu1 %v4232_v3, %s3851_s29 }
0x1985   :  { %v2389_v20 = vpop.permute.xlu0 %2388 }
0x1986   :  { %v2387_v23 = vpop.permute.xlu1 %2386  ;;  %v2397_v3 = vsel %vm1079_vm6, %v2395_v43, %v2389_v20 }
0x1987   :  { %v2396_v24 = vsel %vm1079_vm6, %v2394_v21, %v2387_v23 }
0x1988   :  { %3379 = vmatprep.mubr.msk.f32.mxu0 %vm145_vm2, %v2396_v24 }
0x1989   :  { %3380 = vmatmul.mubr.msk.f32.vlgmr.msra.gmra.mrb[18].mxu0 %vm145_vm2, %v2397_v3 }
0x198a   :  { %v2416_v25 = vpop.permute.xlu1 %2415 }
0x1a5c   :  { %v3381_v27 = vpop.f32.mrb[18].mxu0 }
0x1a5d   :  { %v2496_v56 = vadd.f32 %v3381_v27, %v2416_v25  ;;  %v2490_v30 = vpop.f32.mrb[19].mxu0 }
0x1a5e   :  { %v2491_v32 = vadd.f32 %v2490_v30, %v2416_v25 }
0x1a5f   :  { %v4365_v14 = vadd.f32 %v2496_v56, %v4221_v1  ;;  %v2989_v1 = vld [vmem:[%s4439_s2 + $0x48] sm:$0xff] }
0x1a60   :  { %v2499_v55 = vadd.f32 %v2491_v32, %v4217_v62  ;;  %v4378_v62 = vrot.slane %v4228_v2, %v1218_v44  ;;  %v3582_v60 = vpack.c.bf16 %v2991_v34, %v2989_v1  ;;  %v2993_v44 = vld [vmem:[%s4439_s2 + $0x68] sm:$0xff]  ;;  %v3739_v50 = vpack.i.bf16 %v2991_v34, %v2989_v1 }
0x1a61   :  { %v2504_v15 = vsel %vm145_vm2, %v4365_v14, 0.0  ;;  %v2510_v33 = vmul.f32 %v4365_v14, %v4365_v14  ;;  %v3586_v38 = vpack.c.bf16 %v2995_v63, %v2993_v44  ;;  %v3744_v39 = vpack.i.bf16 %v2995_v63, %v2993_v44  ;;  %v2773_v63 = vld [vmem:[%s4442_s5] sm:$0xff] }
0x1a62   :  { %2505 = vadd.xlane.f32.xlu1 %v2504_v15  ;;  %v2501_v16 = vsel %vm145_vm2, %v2499_v55, 0.0  ;;  %v2509_v36 = vmul.f32 %v2499_v55, %v2499_v55  ;;  %3583 = vmatprep.subr.bf16.mxu1 %v3582_v60  ;;  %v2764_v34 = vrot.slane %v4228_v2, %v1448_v26  ;;  %v3858_v44 = vmov 0.0   ;;  %v2776_v26 = vld [vmem:[%s4442_s5 + $0x18] sm:$0xff] }
0x1a63   :  { %2502 = vadd.xlane.f32.xlu0 %v2501_v16  ;;  %v2514_v57 = vsel %vm145_vm2, %v2510_v33, 0.0  ;;  %3585 = vmatpush3.bf16.msra.mxu1 %v3582_v60  ;;  %v3856_v60 = vmov 0.0|0.0  }
0x1a64   :  { %v2511_v37 = vsel %vm145_vm2, %v2509_v36, 0.0  ;;  %3587 = vmatprep.subr.bf16.mxu1 %v3586_v38 }
0x1a67   :  { %2512 = vadd.xlane.f32.xlu0 %v2511_v37  ;;  %3589 = vmatpush3.bf16.msra.mxu1 %v3586_v38  ;;  %v2774_v38 = vld [vmem:[%s4442_s5 + $0x8] sm:$0xff]  ;;  %s3859_s5 = smov 111  }
0x1a68   :  { %3598 = vmatprep.subr.bf16.mxu1 %v3856_v60  ;;  %v3749_v2 = vpack.i.bf16 %v2774_v38, %v2773_v63 }
0x1a6b   :  { %2515 = vadd.xlane.f32.xlu0 %v2514_v57 }
0x1a73   :  { %2536 = vrot.lane.b32.xlu1 %v4378_v62, %s3844_s22 }
0x1a77   :  { %3740 = vrot.lane.b32.xlu1 %v3739_v50, %s3841_s18  ;;  %v3754_v50 = vpack.i.bf16 %v2776_v26, %v2775_v45 }
0x1a7b   :  { %3745 = vrot.lane.b32.xlu1 %v3744_v39, %s3841_s18 }
0x1a81   :  { %2541 = vrot.lane.b32.xlu0 %v4378_v62, %s3851_s29 }
0x1a85   :  { %2645 = vrot.lane.b32.xlu0 %v4378_v62, %s3841_s18 }
0x1aef   :  { %v2506_v51 = vpop.xlane.xlu1 %2505 }
0x1af0   :  { %v2503_v40 = vpop.xlane.xlu0 %2502  ;;  %v2508_v48 = vmul.f32 0.03125, %v2506_v51 }
0x1af1   :  { %v2507_v41 = vmul.f32 0.03125, %v2503_v40 }
0x1af2   :  { %v2520_v58 = vmul.f32 %v2508_v48, %v2508_v48  ;;  %v2524_v13 = vsub.f32 %v4365_v14, %v2508_v48 }
0x1af3   :  { %v2519_v47 = vmul.f32 %v2507_v41, %v2507_v41  ;;  %v2537_v4 = vpop.permute.xlu1 %2536  ;;  %v2523_v11 = vsub.f32 %v2499_v55, %v2507_v41 }
0x1af4   :  { %v2513_v54 = vpop.xlane.xlu0 %2512 }
0x1af5   :  { %v2517_v31 = vmul.f32 0.03125, %v2513_v54 }
0x1af7   :  { %v2521_v35 = vsub.f32 %v2517_v31, %v2519_v47  ;;  %v3741_v8 = vpop.permute.xlu1 %3740 }
0x1af8   :  { %v2516_v52 = vpop.xlane.xlu0 %2515  ;;  %v3743_v9 = vunpack.i.h.bf16 %v3741_v8  ;;  %v3742_v49 = vunpack.i.l.bf16 %v3741_v8 }
0x1af9   :  { %v2525_v59 = vadd.f32 1e-05, %v2521_v35  ;;  %v2518_v61 = vmul.f32 0.03125, %v2516_v52 }
0x1afa   :  { %v3590_v10 = vpack.c.bf16 %v3743_v9, %v3742_v49 }
0x1afb   :  { %3831 = vrsqrt.f32 %v2525_v59  ;;  %v2522_v0 = vsub.f32 %v2518_v61, %v2520_v58  ;;  %v3746_v28 = vpop.permute.xlu1 %3745 }
0x1afc   :  { %v3748_v53 = vunpack.i.h.bf16 %v3746_v28  ;;  %v3747_v7 = vunpack.i.l.bf16 %v3746_v28  ;;  %3591 = vmatprep.subr.bf16.mxu0 %v3590_v10  ;;  %v2542_v5 = vpop.permute.xlu0 %2541 }
0x1afd   :  { %v2526_v6 = vadd.f32 1e-05, %v2522_v0  ;;  %3593 = vmatpush3.bf16.msra.mxu0 %v3590_v10 }
0x1afe   :  { %v3594_v12 = vpack.c.bf16 %v3748_v53, %v3747_v7 }
0x1aff   :  { %3833 = vrsqrt.f32 %v2526_v6 }
0x1b00   :  { %3595 = vmatprep.subr.bf16.mxu0 %v3594_v12  ;;  %v2646_v56 = vpop.permute.xlu0 %2645 }
0x1b01   :  { %3597 = vmatpush3.bf16.msra.mxu0 %v3594_v12 }
0x1b05   :  { %v3832_v29 = vpop.eup %3831 }
0x1b06   :  { %v2529_v42 = vmul.f32 %v3832_v29, %v2523_v11 }
0x1b08   :  { %v2539_v17 = vmul.f32 %v2537_v4, %v2529_v42 }
0x1b09   :  { %v3834_v18 = vpop.eup %3833 }
0x1b0a   :  { %v2530_v19 = vmul.f32 %v3834_v18, %v2524_v13  ;;  %v2544_v20 = vadd.f32 %v2542_v5, %v2539_v17 }
0x1b0c   :  { %v2540_v21 = vmul.f32 %v2537_v4, %v2530_v19  ;;  %3390 = vmatprep.mubr.msk.f32.mxu1 %vm145_vm2, %v2544_v20 }
0x1b0e   :  { %v2545_v22 = vadd.f32 %v2542_v5, %v2540_v21 }
0x1b10   :  { %3391 = vmatmul.mubr.msk.f32.vlgmr.msra.gmra.mrb[26].mxu1 %vm145_vm2, %v2545_v22 }
0x1b11   :  { %3408 = vmatprep.mubr.msk.f32.mxu1 %vm3857_vm7, %v3858_v44 }
0x1be3   :  { %v3392_v23 = vpop.f32.mrb[26].mxu1 }
0x1be4   :  { %v2624_v43 = vadd.f32 %v3392_v23, %v4378_v62  ;;  %v2618_v24 = vpop.f32.mrb[27].mxu1 }
0x1be5   :  { %v2619_v3 = vadd.f32 %v2618_v24, %v4378_v62 }
0x1be6   :  { %v2628_v27 = vmax.f32 %v2624_v43, 0.0 }
0x1be7   :  { %v2627_v25 = vmax.f32 %v2619_v3, 0.0 }
0x1be9   :  { %3401 = vmatprep.mubr.msk.f32.mxu0 %vm145_vm2, %v2627_v25 }
0x1bea   :  { %3402 = vmatmul.mubr.msk.f32.vlgmr.msra.gmra.mrb[20].mxu0 %vm145_vm2, %v2628_v27 }
0x1cbd   :  { %v3403_v30 = vpop.f32.mrb[20].mxu0 }
0x1cbe   :  { %v2726_v32 = vadd.f32 %v3403_v30, %v2646_v56  ;;  %v2720_v14 = vpop.f32.mrb[21].mxu0 }
0x1cbf   :  { %v2721_v55 = vadd.f32 %v2720_v14, %v2646_v56 }
0x1cc0   :  { %v2730_v15 = vadd.f32 %v2726_v32, %v2545_v22  ;;  %v2853_v22 = vrot.slane %v2773_v63, %v3993_v46 }
0x1cc1   :  { %v2729_v16 = vadd.f32 %v2721_v55, %v2544_v20 }
0x1cc2   :  { %v2734_v36 = vsel %vm145_vm2, %v2730_v15, 0.0  ;;  %v2740_v57 = vmul.f32 %v2730_v15, %v2730_v15 }
0x1cc3   :  { %2735 = vadd.xlane.f32.xlu0 %v2734_v36  ;;  %v2731_v37 = vsel %vm145_vm2, %v2729_v16, 0.0  ;;  %v2739_v33 = vmul.f32 %v2729_v16, %v2729_v16 }
0x1cc4   :  { %2732 = vadd.xlane.f32.xlu1 %v2731_v37  ;;  %v2744_v1 = vsel %vm145_vm2, %v2740_v57, 0.0 }
0x1cc5   :  { %v2741_v62 = vsel %vm145_vm2, %v2739_v33, 0.0 }
0x1cc7   :  { %2742 = vadd.xlane.f32.xlu0 %v2741_v62 }
0x1cc8   :  { %2745 = vadd.xlane.f32.xlu1 %v2744_v1 }
0x1cd9   :  { %3750 = vrot.lane.b32.xlu1 %v3749_v2, %s3846_s24 }
0x1cdd   :  { %2768 = vrot.lane.b32.xlu0 %v2764_v34, %s3841_s18  ;;  %3755 = vrot.lane.b32.xlu1 %v3754_v50, %s3846_s24 }
0x1ce1   :  { %2870 = vrot.lane.b32.xlu0 %v2853_v22, %s3859_s5 }
0x1d50   :  { %v2736_v39 = vpop.xlane.xlu0 %2735 }
0x1d51   :  { %v2733_v40 = vpop.xlane.xlu1 %2732  ;;  %v2738_v41 = vmul.f32 0.03125, %v2736_v39 }
0x1d52   :  { %v2737_v51 = vmul.f32 0.03125, %v2733_v40 }
0x1d53   :  { %v2750_v35 = vmul.f32 %v2738_v41, %v2738_v41  ;;  %v2754_v8 = vsub.f32 %v2730_v15, %v2738_v41 }
0x1d54   :  { %v2749_v54 = vmul.f32 %v2737_v51, %v2737_v51  ;;  %v2743_v48 = vpop.xlane.xlu0 %2742  ;;  %v2753_v4 = vsub.f32 %v2729_v16, %v2737_v51 }
0x1d55   :  { %v2747_v47 = vmul.f32 0.03125, %v2743_v48  ;;  %v2746_v31 = vpop.xlane.xlu1 %2745 }
0x1d56   :  { %v2748_v52 = vmul.f32 0.03125, %v2746_v31 }
0x1d57   :  { %v2751_v58 = vsub.f32 %v2747_v47, %v2749_v54 }
0x1d58   :  { %v2752_v59 = vsub.f32 %v2748_v52, %v2750_v35  ;;  %v2769_v10 = vpop.permute.xlu0 %2768 }
0x1d59   :  { %v2755_v61 = vadd.f32 1e-05, %v2751_v58  ;;  %v3751_v28 = vpop.permute.xlu1 %3750 }
0x1d5a   :  { %v2756_v0 = vadd.f32 1e-05, %v2752_v59  ;;  %v3753_v5 = vunpack.i.h.bf16 %v3751_v28  ;;  %v3752_v12 = vunpack.i.l.bf16 %v3751_v28 }
0x1d5b   :  { %3835 = vrsqrt.f32 %v2755_v61 }
0x1d5c   :  { %3837 = vrsqrt.f32 %v2756_v0  ;;  %v3602_v18 = vpack.c.bf16 %v3753_v5, %v3752_v12  ;;  %v2871_v24 = vpop.permute.xlu0 %2870 }
0x1d5d   :  { %v3756_v13 = vpop.permute.xlu1 %3755 }
0x1d5e   :  { %v3758_v19 = vunpack.i.h.bf16 %v3756_v13  ;;  %v3757_v20 = vunpack.i.l.bf16 %v3756_v13 }
0x1d60   :  { %v3605_v21 = vpack.c.bf16 %v3758_v19, %v3757_v20 }
0x1d65   :  { %v3836_v6 = vpop.eup %3835 }
0x1d66   :  { %v3838_v9 = vpop.eup %3837  ;;  %v2759_v49 = vmul.f32 %v3836_v6, %v2753_v4 }
0x1d67   :  { %v2760_v11 = vmul.f32 %v3838_v9, %v2754_v8 }
0x1d68   :  { %v2765_v29 = vmul.f32 %v2764_v34, %v2759_v49 }
0x1d69   :  { %v2766_v53 = vmul.f32 %v2764_v34, %v2760_v11 }
0x1d6a   :  { %v2771_v7 = vadd.f32 %v2769_v10, %v2765_v29 }
0x1d6b   :  { %v2772_v42 = vadd.f32 %v2769_v10, %v2766_v53 }
0x1d6d   :  { %v3599_v17 = vpack.c.bf16 %v2772_v42, %v2771_v7 }
0x1d6f   :  { %3600 = vmatpush3.bf16.msra.mxu1 %v3599_v17 }
0x1d70   :  { %3601 = vmatprep.subr.bf16.mxu1 %v3856_v60 }
0x1d72   :  { %3409 = vmatmul.mubr.msk.f32.vlgmr.msra.gmra.mrb[28].mxu1 %vm329_vm5, %v2773_v63 }
0x1d73   :  { %3603 = vmatpush3.bf16.msra.mxu1 %v3602_v18  ;;  %3419 = vmatprep.mubr.msk.f32.mxu1 %vm3857_vm7, %v3858_v44 }
0x1d74   :  { %3604 = vmatprep.subr.bf16.mxu1 %v3856_v60 }
0x1d77   :  { %3606 = vmatpush3.bf16.msra.mxu1 %v3605_v21 }
0x1e45   :  { %v2846_v23 = vpop.f32.mrb[28].mxu1 }
0x1e46   :  { %v3410_v43 = vpop.f32.mrb[29].mxu1  ;;  %3420 = vmatmul.mubr.msk.f32.vlgmr.msra.gmra.mrb[30].mxu1 %vm145_vm2, %v2846_v23 }
0x1f19   :  { %v2942_v3 = vpop.f32.mrb[30].mxu1 }
0x1f1a   :  { %v2943_v25 = vadd.f32 %v2942_v3, %v2871_v24  ;;  %v3421_v27 = vpop.f32.mrb[31].mxu1 }
0x1f1c   :  { %2947 = vst.msk [vmem:[%s4443_s6] sm:$0x3] %vm2946_vm8, %v2943_v25 }

</bundles_post_ra>
